<compile_context>
chip_gen: v7x
topology: tpu7x:2x2x1
jax: 0.10.0
libtpu: 0.0.40
codegen_flags: <defaults>
</compile_context>

<pallas_src>
import functools

import numpy as np

import jax
import jax.numpy as jnp
from jax.experimental import pallas as pl
from jax.experimental.pallas import tpu as pltpu

# ---- SARL architecture constants (SB3_vars) ---------------------------------
SELF_STATE_DIM = 6
HUMAN_STATE_DIM = 7
RAW_DIM = 14              # world-coord joint state: robot[0:9] ++ human[9:14]
INPUT_DIM = 13            # length of input_transformation() output
MLP1_DIMS = [64, 32]      # last_relu=True
MLP2_DIMS = [32, 32]
ATTN_DIMS = [32, 32, 1]   # with_global_state=True -> attention input = 2*mlp1[-1]
MLP3_DIMS = [64, 32, 1]   # input = mlp2[-1] + self_state_dim


# ---- packed weight-slab layout (all pieces stored TRANSPOSED: (out, in)) -----
# Kernel computes dot(W^T, x) with x feature-major; biases are (out, 1) columns.
_PARAM_SHAPES = [
    ("w1a_eff_t",  (MLP1_DIMS[0], RAW_DIM)),       # (T @ w1a)^T — transform folded
    ("w1a_da_t",   (MLP1_DIMS[0], 1)),             # w1a row for nonlinear `da`
    ("b1a_t",      (MLP1_DIMS[0], 1)),
    ("w1b_t",      (MLP1_DIMS[1], MLP1_DIMS[0])),
    ("b1b_t",      (MLP1_DIMS[1], 1)),
    ("w2a_t",      (MLP2_DIMS[0], MLP1_DIMS[1])),
    ("b2a_t",      (MLP2_DIMS[0], 1)),
    ("w2b_t",      (MLP2_DIMS[1], MLP2_DIMS[0])),
    ("b2b_t",      (MLP2_DIMS[1], 1)),
    ("wa1_loc_t",  (ATTN_DIMS[0], MLP1_DIMS[1])),
    ("wa1_glb_t",  (ATTN_DIMS[0], MLP1_DIMS[1])),
    ("ba1_t",      (ATTN_DIMS[0], 1)),
    ("wa2_t",      (ATTN_DIMS[1], ATTN_DIMS[0])),
    ("ba2_t",      (ATTN_DIMS[1], 1)),
    ("wa3_t",      (ATTN_DIMS[2], ATTN_DIMS[1])),
    ("ba3_t",      (ATTN_DIMS[2], 1)),
    ("w3a_self_t", (MLP3_DIMS[0], RAW_DIM)),       # (T[:, :6] @ w3a[:6])^T folded
    ("w3a_feat_t", (MLP3_DIMS[0], MLP2_DIMS[1])),
    ("b3a_t",      (MLP3_DIMS[0], 1)),
    ("w3b_t",      (MLP3_DIMS[1], MLP3_DIMS[0])),
    ("b3b_t",      (MLP3_DIMS[1], 1)),
    ("w3c_t",      (MLP3_DIMS[2], MLP3_DIMS[1])),
    ("b3c_t",      (MLP3_DIMS[2], 1)),
]


def _round8(n):
    return (n + 7) // 8 * 8


_LAYOUT = {}
_off = 0
for _name, (_r, _c) in _PARAM_SHAPES:
    _LAYOUT[_name] = (_off, _r, _c)
    _off += _round8(_r)
SLAB_ROWS = _off            # 832 (multiple of 8)
SLAB_COLS = 64


# ---- linear part of input_transformation as a (14, 13) matrix ----------------
def _transform_matrix():
    """transformed = raw @ T  (+ da inserted at feature 11, handled in-kernel)."""
    T = np.zeros((RAW_DIM, INPUT_DIM), np.float32)
    T[5, 0] = 1.0;  T[0, 0] = -1.0      # dx  = gx - px
    T[6, 1] = 1.0;  T[1, 1] = -1.0      # dy  = gy - py
    T[7, 2] = 1.0                        # v_pref
    T[4, 3] = 1.0                        # radius
    T[2, 4] = 1.0                        # vx
    T[3, 5] = 1.0                        # vy
    T[9, 6] = 1.0;  T[0, 6] = -1.0      # px1 = hx - px
    T[10, 7] = 1.0; T[1, 7] = -1.0      # py1 = hy - py
    T[11, 8] = 1.0                       # vx1
    T[12, 9] = 1.0                       # vy1
    T[13, 10] = 1.0                      # radius1
    # feature 11 (da) is nonlinear -> column stays zero
    T[4, 12] = 1.0; T[13, 12] = 1.0      # radius_sum
    return T


# ---- Pallas kernel ------------------------------------------------------------
def _sarl_value_kernel(state_ref, slab_ref, out_ref, *, n_humans, tb):
    """state_ref: (14, n_humans*tb) raw joint states, feature-major; columns are
    ordered human-major within the batch tile (human n -> lanes [n*tb:(n+1)*tb]).
    slab_ref: packed transposed weights.  out_ref: (1, tb) values for the tile."""
    relu = lambda z: jnp.maximum(z, 0.0)
    dot = functools.partial(jnp.dot, preferred_element_type=jnp.float32)

    def wt(name):  # weight slice taken at use site (short live ranges)
        off, r, c = _LAYOUT[name]
        return slab_ref[off:off + r, 0:c]

    X = state_ref[...]                                   # (14, N*tb) lane-dense

    # nonlinear transformed feature: da = |robot_pos - human_pos| (one dense row)
    ddx = X[0:1, :] - X[9:10, :]
    ddy = X[1:2, :] - X[10:11, :]
    da = jnp.sqrt(ddx * ddx + ddy * ddy)                 # (1, N*tb)

    # ---- mlp1 / mlp2, all humans merged into the matmul lane dim -------------
    # linear input-transform folded into w1a_eff_t; da applied as rank-1 update.
    h = relu(dot(wt("w1a_eff_t"), X) + wt("w1a_da_t") * da + wt("b1a_t"))  # (64, N*tb)
    h1 = relu(dot(wt("w1b_t"), h) + wt("b1b_t"))                            # (32, N*tb)
    h2 = dot(wt("w2b_t"), relu(dot(wt("w2a_t"), h1) + wt("b2a_t"))) + wt("b2b_t")

    # ---- global state = mean of h1 over humans (128-aligned lane slices) -----
    g_sum = h1[:, 0:tb]
    for n in range(1, n_humans):
        g_sum = g_sum + h1[:, n * tb:(n + 1) * tb]
    g_att = dot(wt("wa1_glb_t"), g_sum * (1.0 / n_humans)) + wt("ba1_t")   # (32, tb)
    g_att_all = jnp.concatenate([g_att] * n_humans, axis=1)                # (32, N*tb)

    # ---- attention scores, all humans merged ----------------------------------
    a = relu(dot(wt("wa1_loc_t"), h1) + g_att_all)
    a = relu(dot(wt("wa2_t"), a) + wt("ba2_t"))
    scores = dot(wt("wa3_t"), a) + wt("ba3_t")                              # (1, N*tb)

    # ---- min-shift, clamp(max=50), softmax over humans (as in PyTorch) -------
    s = [scores[:, n * tb:(n + 1) * tb] for n in range(n_humans)]           # (1, tb) each
    min_s = s[0]
    for sn in s[1:]:
        min_s = jnp.minimum(min_s, sn)
    es = [jnp.exp(jnp.minimum(sn - min_s, 50.0)) for sn in s]
    sum_e = es[0]
    for e in es[1:]:
        sum_e = sum_e + e
    inv = pl.reciprocal(sum_e, approx=True)                                 # EUP

    wsum = es[0] * h2[:, 0:tb]
    for n in range(1, n_humans):
        wsum = wsum + es[n] * h2[:, n * tb:(n + 1) * tb]
    weighted = wsum * inv                                                    # (32, tb)

    # ---- mlp3 on concat([self_state, weighted]); self-state transform folded --
    x0 = X[:, 0:tb]                                                          # (14, tb)
    v = relu(dot(wt("w3a_self_t"), x0) + dot(wt("w3a_feat_t"), weighted) + wt("b3a_t"))
    v = relu(dot(wt("w3b_t"), v) + wt("b3b_t"))
    out_ref[...] = dot(wt("w3c_t"), v) + wt("b3c_t")                         # (1, tb)


# ---- wrapper -------------------------------------------------------------------
def sarl_value(raw_state, slab, *, tb=None):
    """raw_state: (B, N, 14) world-coord joint states. Returns (B, 1) value."""
    B, N, D = raw_state.shape
    assert D == RAW_DIM

    if tb is None:
        # 256 matches the 256-wide MXU on v6e/v7x; keep grid length >= 2 so both
        # v7x TensorCores get work, else fall back to 128. (v5e: try tb=512.)
        tb = 256 if B > 256 else 128

    G = pl.cdiv(B, tb)
    Bp = G * tb
    x = raw_state
    if Bp != B:
        x = jnp.pad(x, ((0, Bp - B), (0, 0), (0, 0)))

    # Feature-major relayout (layout plumbing in the wrapper):
    # (Bp,N,14) -> (G,TB,N,14) -> (14,G,N,TB) -> (14, G*N*TB)
    # so each grid tile is a contiguous lane-dense (14, N*TB) slab.
    x = x.reshape(G, tb, N, D).transpose(3, 0, 2, 1).reshape(D, G * N * tb)

    out = pl.pallas_call(
        functools.partial(_sarl_value_kernel, n_humans=N, tb=tb),
        out_shape=jax.ShapeDtypeStruct((1, Bp), jnp.float32),
        grid_spec=pltpu.PrefetchScalarGridSpec(
            num_scalar_prefetch=0,
            grid=(G,),
            in_specs=[
                pl.BlockSpec((D, N * tb), lambda g: (0, g)),
                # constant-index weight slab (double-buffered ~0.4 MB; negligible)
                pl.BlockSpec((SLAB_ROWS, SLAB_COLS), lambda g: (0, 0)),
            ],
            out_specs=pl.BlockSpec((1, tb), lambda g: (0, g)),   # lane-dense store
        ),
        compiler_params=pltpu.CompilerParams(
            dimension_semantics=("parallel",)),
    )(x, slab)
    return out[0, :B].reshape(B, 1)


# ---- parameter init (torch.nn.Linear default U(+-1/sqrt(fan_in))) -------------
def _linear(key, fan_in, fan_out):
    kw, kb = jax.random.split(key)
    bound = 1.0 / float(fan_in) ** 0.5
    w = jax.random.uniform(kw, (fan_in, fan_out), jnp.float32, -bound, bound)
    b = jax.random.uniform(kb, (1, fan_out), jnp.float32, -bound, bound)
    return w, b


def init_params(key):
    keys = jax.random.split(key, 10)
    p = {}
    p["w1a"], p["b1a"] = _linear(keys[0], INPUT_DIM, MLP1_DIMS[0])
    p["w1b"], p["b1b"] = _linear(keys[1], MLP1_DIMS[0], MLP1_DIMS[1])
    p["w2a"], p["b2a"] = _linear(keys[2], MLP1_DIMS[1], MLP2_DIMS[0])
    p["w2b"], p["b2b"] = _linear(keys[3], MLP2_DIMS[0], MLP2_DIMS[1])
    p["wa1"], p["ba1"] = _linear(keys[4], 2 * MLP1_DIMS[1], ATTN_DIMS[0])
    p["wa2"], p["ba2"] = _linear(keys[5], ATTN_DIMS[0], ATTN_DIMS[1])
    p["wa3"], p["ba3"] = _linear(keys[6], ATTN_DIMS[1], ATTN_DIMS[2])
    p["w3a"], p["b3a"] = _linear(keys[7], SELF_STATE_DIM + MLP2_DIMS[1], MLP3_DIMS[0])
    p["w3b"], p["b3b"] = _linear(keys[8], MLP3_DIMS[0], MLP3_DIMS[1])
    p["w3c"], p["b3c"] = _linear(keys[9], MLP3_DIMS[1], MLP3_DIMS[2])
    return p


def pack_params(params):
    """Fold the linear input transform into w1a / w3a, transpose everything to
    (out, in) orientation and pack into one (SLAB_ROWS, SLAB_COLS) f32 slab."""
    T = np.asarray(_transform_matrix(), np.float64)              # (14, 13)
    w1a = np.asarray(params["w1a"], np.float64)                  # (13, 64)
    w3a = np.asarray(params["w3a"], np.float64)                  # (38, 64)
    wa1 = np.asarray(params["wa1"], np.float64)                  # (64, 32)

    def col(b):                                                  # (1, out) -> (out, 1)
        return np.asarray(b, np.float64).T

    pieces = {
        "w1a_eff_t":  (T @ w1a).T,                               # (64, 14)
        "w1a_da_t":   w1a[11:12, :].T,                           # (64, 1)
        "b1a_t":      col(params["b1a"]),
        "w1b_t":      np.asarray(params["w1b"]).T, "b1b_t": col(params["b1b"]),
        "w2a_t":      np.asarray(params["w2a"]).T, "b2a_t": col(params["b2a"]),
        "w2b_t":      np.asarray(params["w2b"]).T, "b2b_t": col(params["b2b"]),
        "wa1_loc_t":  wa1[:MLP1_DIMS[1], :].T,
        "wa1_glb_t":  wa1[MLP1_DIMS[1]:, :].T,
        "ba1_t":      col(params["ba1"]),
        "wa2_t":      np.asarray(params["wa2"]).T, "ba2_t": col(params["ba2"]),
        "wa3_t":      np.asarray(params["wa3"]).T, "ba3_t": col(params["ba3"]),
        "w3a_self_t": (T[:, :SELF_STATE_DIM] @ w3a[:SELF_STATE_DIM, :]).T,  # (64, 14)
        "w3a_feat_t": w3a[SELF_STATE_DIM:, :].T,                 # (64, 32)
        "b3a_t":      col(params["b3a"]),
        "w3b_t":      np.asarray(params["w3b"]).T, "b3b_t": col(params["b3b"]),
        "w3c_t":      np.asarray(params["w3c"]).T, "b3c_t": col(params["b3c"]),
    }

    slab = np.zeros((SLAB_ROWS, SLAB_COLS), np.float32)
    for name, (r, c) in _PARAM_SHAPES:
        arr = np.asarray(pieces[name], np.float32)
        assert arr.shape == (r, c), (name, arr.shape, (r, c))
        off, _, _ = _LAYOUT[name]
        slab[off:off + r, :c] = arr
    return jnp.asarray(slab)


# ---- pure-JAX reference (mirrors PyTorch value_calculation) ---------------------
def input_transformation(state):
    dx = state[..., 5] - state[..., 0]
    dy = state[..., 6] - state[..., 1]
    v_pref = state[..., 7]
    radius = state[..., 4]
    vx = state[..., 2]
    vy = state[..., 3]
    px1 = state[..., 9] - state[..., 0]
    py1 = state[..., 10] - state[..., 1]
    vx1 = state[..., 11]
    vy1 = state[..., 12]
    radius1 = state[..., 13]
    da = jnp.sqrt((state[..., 0] - state[..., 9]) ** 2 +
                  (state[..., 1] - state[..., 10]) ** 2)
    radius_sum = radius + radius1
    return jnp.stack([dx, dy, v_pref, radius, vx, vy, px1, py1,
                      vx1, vy1, radius1, da, radius_sum], axis=-1)


def sarl_value_ref(raw, p):
    state = input_transformation(raw)                       # (B, N, 13)
    B, N, D = state.shape
    relu = lambda z: jnp.maximum(z, 0.0)
    x = state.reshape(B * N, D)
    h1 = relu(relu(x @ p["w1a"] + p["b1a"]) @ p["w1b"] + p["b1b"])
    h2 = relu(h1 @ p["w2a"] + p["b2a"]) @ p["w2b"] + p["b2b"]
    g = jnp.mean(h1.reshape(B, N, -1), axis=1, keepdims=True)
    g = jnp.broadcast_to(g, (B, N, h1.shape[-1])).reshape(B * N, -1)
    a = relu(jnp.concatenate([h1, g], axis=1) @ p["wa1"] + p["ba1"])
    a = relu(a @ p["wa2"] + p["ba2"])
    scores = (a @ p["wa3"] + p["ba3"]).reshape(B, N)
    m = jnp.min(scores, axis=1, keepdims=True)
    adj = jnp.minimum(scores - m, 50.0)
    w = jax.nn.softmax(adj, axis=1)[..., None]
    weighted = jnp.sum(w * h2.reshape(B, N, -1), axis=1)
    joint = jnp.concatenate([state[:, 0, :SELF_STATE_DIM], weighted], axis=1)
    v = relu(joint @ p["w3a"] + p["b3a"])
    v = relu(v @ p["w3b"] + p["b3b"])
    return v @ p["w3c"] + p["b3c"]


# TODO(synk): the dict-observation branch of forward() (Q-value enumeration over
# env.action_space_map, per-action rewards and the self.attention_weights numpy
# side-effect) is env/host-dependent and is not part of the kernel.

if __name__ == "__main__":
    key = jax.random.PRNGKey(0)
    k_state, k_params = jax.random.split(key)

    B, N = 200, 5                                  # batch, humans (pads to 2 tiles)
    raw = jax.random.normal(k_state, (B, N, RAW_DIM), jnp.float32)

    params = init_params(k_params)
    slab = pack_params(params)

    run = jax.jit(sarl_value)
    out = jax.block_until_ready(run(raw, slab))

    ref = sarl_value_ref(raw, params)
    assert out.shape == (B, 1), out.shape
    max_err = float(jnp.max(jnp.abs(out - ref)))
    assert jnp.allclose(out, ref, rtol=5e-3, atol=5e-3), (max_err, out[:4], ref[:4])
    print("KERNEL_OK")
</pallas_src>

<mosaic_0001>
module attributes {stable_mosaic.version = 11 : i64} {
  func.func @_sarl_value_kernel(%arg0: i32, %arg1: memref<14x640xf32, #tpu.memory_space<vmem>>, %arg2: memref<832x64xf32, #tpu.memory_space<vmem>>, %arg3: memref<1x128xf32, #tpu.memory_space<vmem>>) attributes {dimension_semantics = [#tpu.dimension_semantics<parallel>], iteration_bounds = array<i64: 2>, scalar_prefetch = 0 : i64, scratch_operands = 0 : i64, tpu.core_type = #tpu.core_type<tc>, window_params = [{transform_indices = @transform_0, window_bounds = array<i64: 14, 640>}, {pipeline_mode = #tpu.pipeline_mode<synchronous>, transform_indices = @transform_1, window_bounds = array<i64: 832, 64>}, {transform_indices = @transform_2, window_bounds = array<i64: 1, 128>}]} {
    %c0 = arith.constant 0 : index
    %c0_0 = arith.constant 0 : index
    %0 = vector.load %arg1[%c0, %c0_0] : memref<14x640xf32, #tpu.memory_space<vmem>>, vector<14x640xf32>
    %1 = vector.extract_strided_slice %0 {offsets = [0, 0], sizes = [1, 640], strides = [1, 1]} : vector<14x640xf32> to vector<1x640xf32>
    %2 = vector.extract_strided_slice %0 {offsets = [9, 0], sizes = [1, 640], strides = [1, 1]} : vector<14x640xf32> to vector<1x640xf32>
    %3 = arith.subf %1, %2 : vector<1x640xf32>
    %4 = vector.extract_strided_slice %0 {offsets = [1, 0], sizes = [1, 640], strides = [1, 1]} : vector<14x640xf32> to vector<1x640xf32>
    %5 = vector.extract_strided_slice %0 {offsets = [10, 0], sizes = [1, 640], strides = [1, 1]} : vector<14x640xf32> to vector<1x640xf32>
    %6 = arith.subf %4, %5 : vector<1x640xf32>
    %7 = arith.mulf %3, %3 : vector<1x640xf32>
    %8 = arith.mulf %6, %6 : vector<1x640xf32>
    %9 = arith.addf %7, %8 : vector<1x640xf32>
    %10 = math.sqrt %9 : vector<1x640xf32>
    %c0_1 = arith.constant 0 : index
    %c0_2 = arith.constant 0 : index
    %11 = vector.load %arg2[%c0_1, %c0_2] : memref<832x64xf32, #tpu.memory_space<vmem>>, vector<64x14xf32>
    %cst = arith.constant dense<0.000000e+00> : vector<64x640xf32>
    %12 = tpu.matmul %11, %0, %cst {dimension_numbers = #tpu.dot_dimension_numbers<[1], [0], [0], [1], [0, 0, 1, 1], [], []>} : vector<64x14xf32>, vector<14x640xf32>, vector<64x640xf32> -> vector<64x640xf32>
    %c64 = arith.constant 64 : index
    %c0_3 = arith.constant 0 : index
    %13 = vector.load %arg2[%c64, %c0_3] : memref<832x64xf32, #tpu.memory_space<vmem>>, vector<64x1xf32>
    %14 = vector.broadcast %13 : vector<64x1xf32> to vector<64x640xf32>
    %15 = vector.broadcast %10 : vector<1x640xf32> to vector<64x640xf32>
    %16 = arith.mulf %14, %15 : vector<64x640xf32>
    %17 = arith.addf %12, %16 : vector<64x640xf32>
    %c128 = arith.constant 128 : index
    %c0_4 = arith.constant 0 : index
    %18 = vector.load %arg2[%c128, %c0_4] : memref<832x64xf32, #tpu.memory_space<vmem>>, vector<64x1xf32>
    %19 = vector.broadcast %18 : vector<64x1xf32> to vector<64x640xf32>
    %20 = arith.addf %17, %19 : vector<64x640xf32>
    %cst_5 = arith.constant 0.000000e+00 : f32
    %21 = vector.broadcast %cst_5 : f32 to vector<64x640xf32>
    %22 = arith.maximumf %20, %21 : vector<64x640xf32>
    %c192 = arith.constant 192 : index
    %c0_6 = arith.constant 0 : index
    %23 = vector.load %arg2[%c192, %c0_6] : memref<832x64xf32, #tpu.memory_space<vmem>>, vector<32x64xf32>
    %cst_7 = arith.constant dense<0.000000e+00> : vector<32x640xf32>
    %24 = tpu.matmul %23, %22, %cst_7 {dimension_numbers = #tpu.dot_dimension_numbers<[1], [0], [0], [1], [0, 0, 1, 1], [], []>} : vector<32x64xf32>, vector<64x640xf32>, vector<32x640xf32> -> vector<32x640xf32>
    %c224 = arith.constant 224 : index
    %c0_8 = arith.constant 0 : index
    %25 = vector.load %arg2[%c224, %c0_8] : memref<832x64xf32, #tpu.memory_space<vmem>>, vector<32x1xf32>
    %26 = vector.broadcast %25 : vector<32x1xf32> to vector<32x640xf32>
    %27 = arith.addf %24, %26 : vector<32x640xf32>
    %cst_9 = arith.constant 0.000000e+00 : f32
    %28 = vector.broadcast %cst_9 : f32 to vector<32x640xf32>
    %29 = arith.maximumf %27, %28 : vector<32x640xf32>
    %c320 = arith.constant 320 : index
    %c0_10 = arith.constant 0 : index
    %30 = vector.load %arg2[%c320, %c0_10] : memref<832x64xf32, #tpu.memory_space<vmem>>, vector<32x32xf32>
    %c256 = arith.constant 256 : index
    %c0_11 = arith.constant 0 : index
    %31 = vector.load %arg2[%c256, %c0_11] : memref<832x64xf32, #tpu.memory_space<vmem>>, vector<32x32xf32>
    %cst_12 = arith.constant dense<0.000000e+00> : vector<32x640xf32>
    %32 = tpu.matmul %31, %29, %cst_12 {dimension_numbers = #tpu.dot_dimension_numbers<[1], [0], [0], [1], [0, 0, 1, 1], [], []>} : vector<32x32xf32>, vector<32x640xf32>, vector<32x640xf32> -> vector<32x640xf32>
    %c288 = arith.constant 288 : index
    %c0_13 = arith.constant 0 : index
    %33 = vector.load %arg2[%c288, %c0_13] : memref<832x64xf32, #tpu.memory_space<vmem>>, vector<32x1xf32>
    %34 = vector.broadcast %33 : vector<32x1xf32> to vector<32x640xf32>
    %35 = arith.addf %32, %34 : vector<32x640xf32>
    %cst_14 = arith.constant 0.000000e+00 : f32
    %36 = vector.broadcast %cst_14 : f32 to vector<32x640xf32>
    %37 = arith.maximumf %35, %36 : vector<32x640xf32>
    %cst_15 = arith.constant dense<0.000000e+00> : vector<32x640xf32>
    %38 = tpu.matmul %30, %37, %cst_15 {dimension_numbers = #tpu.dot_dimension_numbers<[1], [0], [0], [1], [0, 0, 1, 1], [], []>} : vector<32x32xf32>, vector<32x640xf32>, vector<32x640xf32> -> vector<32x640xf32>
    %c352 = arith.constant 352 : index
    %c0_16 = arith.constant 0 : index
    %39 = vector.load %arg2[%c352, %c0_16] : memref<832x64xf32, #tpu.memory_space<vmem>>, vector<32x1xf32>
    %40 = vector.broadcast %39 : vector<32x1xf32> to vector<32x640xf32>
    %41 = arith.addf %38, %40 : vector<32x640xf32>
    %42 = vector.extract_strided_slice %29 {offsets = [0, 0], sizes = [32, 128], strides = [1, 1]} : vector<32x640xf32> to vector<32x128xf32>
    %43 = vector.extract_strided_slice %29 {offsets = [0, 128], sizes = [32, 128], strides = [1, 1]} : vector<32x640xf32> to vector<32x128xf32>
    %44 = arith.addf %42, %43 : vector<32x128xf32>
    %45 = vector.extract_strided_slice %29 {offsets = [0, 256], sizes = [32, 128], strides = [1, 1]} : vector<32x640xf32> to vector<32x128xf32>
    %46 = arith.addf %44, %45 : vector<32x128xf32>
    %47 = vector.extract_strided_slice %29 {offsets = [0, 384], sizes = [32, 128], strides = [1, 1]} : vector<32x640xf32> to vector<32x128xf32>
    %48 = arith.addf %46, %47 : vector<32x128xf32>
    %49 = vector.extract_strided_slice %29 {offsets = [0, 512], sizes = [32, 128], strides = [1, 1]} : vector<32x640xf32> to vector<32x128xf32>
    %50 = arith.addf %48, %49 : vector<32x128xf32>
    %c416 = arith.constant 416 : index
    %c0_17 = arith.constant 0 : index
    %51 = vector.load %arg2[%c416, %c0_17] : memref<832x64xf32, #tpu.memory_space<vmem>>, vector<32x32xf32>
    %cst_18 = arith.constant 2.000000e-01 : f32
    %52 = vector.broadcast %cst_18 : f32 to vector<32x128xf32>
    %53 = arith.mulf %50, %52 : vector<32x128xf32>
    %cst_19 = arith.constant dense<0.000000e+00> : vector<32x128xf32>
    %54 = tpu.matmul %51, %53, %cst_19 {dimension_numbers = #tpu.dot_dimension_numbers<[1], [0], [0], [1], [0, 0, 1, 1], [], []>} : vector<32x32xf32>, vector<32x128xf32>, vector<32x128xf32> -> vector<32x128xf32>
    %c448 = arith.constant 448 : index
    %c0_20 = arith.constant 0 : index
    %55 = vector.load %arg2[%c448, %c0_20] : memref<832x64xf32, #tpu.memory_space<vmem>>, vector<32x1xf32>
    %56 = vector.broadcast %55 : vector<32x1xf32> to vector<32x128xf32>
    %57 = arith.addf %54, %56 : vector<32x128xf32>
    %58 = tpu.concatenate %57, %57, %57, %57, %57 in 1 : vector<32x128xf32>, vector<32x128xf32>, vector<32x128xf32>, vector<32x128xf32>, vector<32x128xf32> -> vector<32x640xf32>
    %c384 = arith.constant 384 : index
    %c0_21 = arith.constant 0 : index
    %59 = vector.load %arg2[%c384, %c0_21] : memref<832x64xf32, #tpu.memory_space<vmem>>, vector<32x32xf32>
    %cst_22 = arith.constant dense<0.000000e+00> : vector<32x640xf32>
    %60 = tpu.matmul %59, %29, %cst_22 {dimension_numbers = #tpu.dot_dimension_numbers<[1], [0], [0], [1], [0, 0, 1, 1], [], []>} : vector<32x32xf32>, vector<32x640xf32>, vector<32x640xf32> -> vector<32x640xf32>
    %61 = arith.addf %60, %58 : vector<32x640xf32>
    %cst_23 = arith.constant 0.000000e+00 : f32
    %62 = vector.broadcast %cst_23 : f32 to vector<32x640xf32>
    %63 = arith.maximumf %61, %62 : vector<32x640xf32>
    %c480 = arith.constant 480 : index
    %c0_24 = arith.constant 0 : index
    %64 = vector.load %arg2[%c480, %c0_24] : memref<832x64xf32, #tpu.memory_space<vmem>>, vector<32x32xf32>
    %cst_25 = arith.constant dense<0.000000e+00> : vector<32x640xf32>
    %65 = tpu.matmul %64, %63, %cst_25 {dimension_numbers = #tpu.dot_dimension_numbers<[1], [0], [0], [1], [0, 0, 1, 1], [], []>} : vector<32x32xf32>, vector<32x640xf32>, vector<32x640xf32> -> vector<32x640xf32>
    %c512 = arith.constant 512 : index
    %c0_26 = arith.constant 0 : index
    %66 = vector.load %arg2[%c512, %c0_26] : memref<832x64xf32, #tpu.memory_space<vmem>>, vector<32x1xf32>
    %67 = vector.broadcast %66 : vector<32x1xf32> to vector<32x640xf32>
    %68 = arith.addf %65, %67 : vector<32x640xf32>
    %cst_27 = arith.constant 0.000000e+00 : f32
    %69 = vector.broadcast %cst_27 : f32 to vector<32x640xf32>
    %70 = arith.maximumf %68, %69 : vector<32x640xf32>
    %c544 = arith.constant 544 : index
    %c0_28 = arith.constant 0 : index
    %71 = vector.load %arg2[%c544, %c0_28] : memref<832x64xf32, #tpu.memory_space<vmem>>, vector<1x32xf32>
    %cst_29 = arith.constant dense<0.000000e+00> : vector<1x640xf32>
    %72 = tpu.matmul %71, %70, %cst_29 {dimension_numbers = #tpu.dot_dimension_numbers<[1], [0], [0], [1], [0, 0, 1, 1], [], []>} : vector<1x32xf32>, vector<32x640xf32>, vector<1x640xf32> -> vector<1x640xf32>
    %c552 = arith.constant 552 : index
    %c0_30 = arith.constant 0 : index
    %73 = vector.load %arg2[%c552, %c0_30] : memref<832x64xf32, #tpu.memory_space<vmem>>, vector<1x1xf32>
    %74 = vector.broadcast %73 : vector<1x1xf32> to vector<1x640xf32>
    %75 = arith.addf %72, %74 : vector<1x640xf32>
    %76 = vector.extract_strided_slice %75 {offsets = [0, 0], sizes = [1, 128], strides = [1, 1]} : vector<1x640xf32> to vector<1x128xf32>
    %77 = vector.extract_strided_slice %75 {offsets = [0, 128], sizes = [1, 128], strides = [1, 1]} : vector<1x640xf32> to vector<1x128xf32>
    %78 = vector.extract_strided_slice %75 {offsets = [0, 256], sizes = [1, 128], strides = [1, 1]} : vector<1x640xf32> to vector<1x128xf32>
    %79 = vector.extract_strided_slice %75 {offsets = [0, 384], sizes = [1, 128], strides = [1, 1]} : vector<1x640xf32> to vector<1x128xf32>
    %80 = vector.extract_strided_slice %75 {offsets = [0, 512], sizes = [1, 128], strides = [1, 1]} : vector<1x640xf32> to vector<1x128xf32>
    %81 = arith.minimumf %76, %77 : vector<1x128xf32>
    %82 = arith.minimumf %81, %78 : vector<1x128xf32>
    %83 = arith.minimumf %82, %79 : vector<1x128xf32>
    %84 = arith.minimumf %83, %80 : vector<1x128xf32>
    %85 = arith.subf %76, %84 : vector<1x128xf32>
    %cst_31 = arith.constant 5.000000e+01 : f32
    %86 = vector.broadcast %cst_31 : f32 to vector<1x128xf32>
    %87 = arith.minimumf %85, %86 : vector<1x128xf32>
    %88 = math.exp %87 : vector<1x128xf32>
    %89 = arith.subf %77, %84 : vector<1x128xf32>
    %cst_32 = arith.constant 5.000000e+01 : f32
    %90 = vector.broadcast %cst_32 : f32 to vector<1x128xf32>
    %91 = arith.minimumf %89, %90 : vector<1x128xf32>
    %92 = math.exp %91 : vector<1x128xf32>
    %93 = arith.subf %78, %84 : vector<1x128xf32>
    %cst_33 = arith.constant 5.000000e+01 : f32
    %94 = vector.broadcast %cst_33 : f32 to vector<1x128xf32>
    %95 = arith.minimumf %93, %94 : vector<1x128xf32>
    %96 = math.exp %95 : vector<1x128xf32>
    %97 = arith.subf %79, %84 : vector<1x128xf32>
    %cst_34 = arith.constant 5.000000e+01 : f32
    %98 = vector.broadcast %cst_34 : f32 to vector<1x128xf32>
    %99 = arith.minimumf %97, %98 : vector<1x128xf32>
    %100 = math.exp %99 : vector<1x128xf32>
    %101 = arith.subf %80, %84 : vector<1x128xf32>
    %cst_35 = arith.constant 5.000000e+01 : f32
    %102 = vector.broadcast %cst_35 : f32 to vector<1x128xf32>
    %103 = arith.minimumf %101, %102 : vector<1x128xf32>
    %104 = math.exp %103 : vector<1x128xf32>
    %105 = arith.addf %88, %92 : vector<1x128xf32>
    %106 = arith.addf %105, %96 : vector<1x128xf32>
    %107 = arith.addf %106, %100 : vector<1x128xf32>
    %108 = arith.addf %107, %104 : vector<1x128xf32>
    %109 = tpu.reciprocal %108 {approx = true} : vector<1x128xf32> -> vector<1x128xf32>
    %110 = vector.extract_strided_slice %41 {offsets = [0, 0], sizes = [32, 128], strides = [1, 1]} : vector<32x640xf32> to vector<32x128xf32>
    %111 = vector.broadcast %88 : vector<1x128xf32> to vector<32x128xf32>
    %112 = arith.mulf %111, %110 : vector<32x128xf32>
    %113 = vector.extract_strided_slice %41 {offsets = [0, 128], sizes = [32, 128], strides = [1, 1]} : vector<32x640xf32> to vector<32x128xf32>
    %114 = vector.broadcast %92 : vector<1x128xf32> to vector<32x128xf32>
    %115 = arith.mulf %114, %113 : vector<32x128xf32>
    %116 = arith.addf %112, %115 : vector<32x128xf32>
    %117 = vector.extract_strided_slice %41 {offsets = [0, 256], sizes = [32, 128], strides = [1, 1]} : vector<32x640xf32> to vector<32x128xf32>
    %118 = vector.broadcast %96 : vector<1x128xf32> to vector<32x128xf32>
    %119 = arith.mulf %118, %117 : vector<32x128xf32>
    %120 = arith.addf %116, %119 : vector<32x128xf32>
    %121 = vector.extract_strided_slice %41 {offsets = [0, 384], sizes = [32, 128], strides = [1, 1]} : vector<32x640xf32> to vector<32x128xf32>
    %122 = vector.broadcast %100 : vector<1x128xf32> to vector<32x128xf32>
    %123 = arith.mulf %122, %121 : vector<32x128xf32>
    %124 = arith.addf %120, %123 : vector<32x128xf32>
    %125 = vector.extract_strided_slice %41 {offsets = [0, 512], sizes = [32, 128], strides = [1, 1]} : vector<32x640xf32> to vector<32x128xf32>
    %126 = vector.broadcast %104 : vector<1x128xf32> to vector<32x128xf32>
    %127 = arith.mulf %126, %125 : vector<32x128xf32>
    %128 = arith.addf %124, %127 : vector<32x128xf32>
    %129 = vector.broadcast %109 : vector<1x128xf32> to vector<32x128xf32>
    %130 = arith.mulf %128, %129 : vector<32x128xf32>
    %131 = vector.extract_strided_slice %0 {offsets = [0, 0], sizes = [14, 128], strides = [1, 1]} : vector<14x640xf32> to vector<14x128xf32>
    %c560 = arith.constant 560 : index
    %c0_36 = arith.constant 0 : index
    %132 = vector.load %arg2[%c560, %c0_36] : memref<832x64xf32, #tpu.memory_space<vmem>>, vector<64x14xf32>
    %cst_37 = arith.constant dense<0.000000e+00> : vector<64x128xf32>
    %133 = tpu.matmul %132, %131, %cst_37 {dimension_numbers = #tpu.dot_dimension_numbers<[1], [0], [0], [1], [0, 0, 1, 1], [], []>} : vector<64x14xf32>, vector<14x128xf32>, vector<64x128xf32> -> vector<64x128xf32>
    %c624 = arith.constant 624 : index
    %c0_38 = arith.constant 0 : index
    %134 = vector.load %arg2[%c624, %c0_38] : memref<832x64xf32, #tpu.memory_space<vmem>>, vector<64x32xf32>
    %cst_39 = arith.constant dense<0.000000e+00> : vector<64x128xf32>
    %135 = tpu.matmul %134, %130, %cst_39 {dimension_numbers = #tpu.dot_dimension_numbers<[1], [0], [0], [1], [0, 0, 1, 1], [], []>} : vector<64x32xf32>, vector<32x128xf32>, vector<64x128xf32> -> vector<64x128xf32>
    %136 = arith.addf %133, %135 : vector<64x128xf32>
    %c688 = arith.constant 688 : index
    %c0_40 = arith.constant 0 : index
    %137 = vector.load %arg2[%c688, %c0_40] : memref<832x64xf32, #tpu.memory_space<vmem>>, vector<64x1xf32>
    %138 = vector.broadcast %137 : vector<64x1xf32> to vector<64x128xf32>
    %139 = arith.addf %136, %138 : vector<64x128xf32>
    %cst_41 = arith.constant 0.000000e+00 : f32
    %140 = vector.broadcast %cst_41 : f32 to vector<64x128xf32>
    %141 = arith.maximumf %139, %140 : vector<64x128xf32>
    %c752 = arith.constant 752 : index
    %c0_42 = arith.constant 0 : index
    %142 = vector.load %arg2[%c752, %c0_42] : memref<832x64xf32, #tpu.memory_space<vmem>>, vector<32x64xf32>
    %cst_43 = arith.constant dense<0.000000e+00> : vector<32x128xf32>
    %143 = tpu.matmul %142, %141, %cst_43 {dimension_numbers = #tpu.dot_dimension_numbers<[1], [0], [0], [1], [0, 0, 1, 1], [], []>} : vector<32x64xf32>, vector<64x128xf32>, vector<32x128xf32> -> vector<32x128xf32>
    %c784 = arith.constant 784 : index
    %c0_44 = arith.constant 0 : index
    %144 = vector.load %arg2[%c784, %c0_44] : memref<832x64xf32, #tpu.memory_space<vmem>>, vector<32x1xf32>
    %145 = vector.broadcast %144 : vector<32x1xf32> to vector<32x128xf32>
    %146 = arith.addf %143, %145 : vector<32x128xf32>
    %cst_45 = arith.constant 0.000000e+00 : f32
    %147 = vector.broadcast %cst_45 : f32 to vector<32x128xf32>
    %148 = arith.maximumf %146, %147 : vector<32x128xf32>
    %c816 = arith.constant 816 : index
    %c0_46 = arith.constant 0 : index
    %149 = vector.load %arg2[%c816, %c0_46] : memref<832x64xf32, #tpu.memory_space<vmem>>, vector<1x32xf32>
    %cst_47 = arith.constant dense<0.000000e+00> : vector<1x128xf32>
    %150 = tpu.matmul %149, %148, %cst_47 {dimension_numbers = #tpu.dot_dimension_numbers<[1], [0], [0], [1], [0, 0, 1, 1], [], []>} : vector<1x32xf32>, vector<32x128xf32>, vector<1x128xf32> -> vector<1x128xf32>
    %c824 = arith.constant 824 : index
    %c0_48 = arith.constant 0 : index
    %151 = vector.load %arg2[%c824, %c0_48] : memref<832x64xf32, #tpu.memory_space<vmem>>, vector<1x1xf32>
    %152 = vector.broadcast %151 : vector<1x1xf32> to vector<1x128xf32>
    %153 = arith.addf %150, %152 : vector<1x128xf32>
    %c0_49 = arith.constant 0 : index
    %c0_50 = arith.constant 0 : index
    %154 = vector.load %arg3[%c0_49, %c0_50] : memref<1x128xf32, #tpu.memory_space<vmem>>, vector<1x128xf32>
    tpu.vector_store %arg3[%c0_49, %c0_50], %153 {strides = array<i32>} : memref<1x128xf32, #tpu.memory_space<vmem>>, vector<1x128xf32>,
    return
  }
  func.func @transform_0(%arg0: i32) -> (i32, i32) {
    %c0_i32 = arith.constant 0 : i32
    %c0_i32_0 = arith.constant 0 : i32
    return %c0_i32, %arg0 : i32, i32
  }
  func.func @transform_1(%arg0: i32) -> (i32, i32) {
    %c0_i32 = arith.constant 0 : i32
    %c0_i32_0 = arith.constant 0 : i32
    %c0_i32_1 = arith.constant 0 : i32
    return %c0_i32, %c0_i32_0 : i32, i32
  }
  func.func @transform_2(%arg0: i32) -> (i32, i32) {
    %c0_i32 = arith.constant 0 : i32
    %c0_i32_0 = arith.constant 0 : i32
    return %c0_i32, %arg0 : i32, i32
  }
}

</mosaic_0001>

<bundles_post_ra>
// kernel: sarl_value.1
= control target key start
LH: loop header
LB: loop body
LE: loop exit
PB: predicated region body
PF: predicated region fallthrough
CT: control target
= control target key end

     0   :  { %s4270_s9 = smov 0   ;;  %s4272_s10 = smov 0   ;;  %s5236_s0 = inlined_call_operand.vmem [shape: f32[14,1280], index: 0, kind: input, shape index: {}]   ;;  %s5237_s1 = inlined_call_operand.vmem [shape: f32[832,64], index: 1, kind: input, shape index: {}]   ;;  %s5238_s2 = inlined_call_operand.vmem [shape: f32[1,256], index: 2, kind: output, shape index: {}]  }
   0x1   :  { %s4274_s11 = smov 0  }
   0x2 LB: > { %s3514_s12 = sadd.s32 4294967295, %s4248_s11   ;;  %s4287_s13 = sadd.s32 1, %s4248_s11   ;;  %s4248_s11 = sphi %s4274_s11, %s5243_s11   ;;  %s4244_s10 = sphi %s4272_s10, %s5242_s10   ;;  %s4240_s9 = sphi %s4270_s9, %s5241_s9  }
   0x3   : > { %s16_s14 = ssub.s32 %s4248_s11, %s4287_s13  ;;  %s19_s15 = sadd.s32 1, %s4244_s10 }
   0x4   : > { %p17_p0 = scmp.eq.s32.totalorder %s16_s14, 0  ;;  %p26_p1 = scmp.ne.s32.totalorder %s4244_s10, %s4240_s9 }
   0x5   : > { %p27_p2 = scmp.eq.s32.totalorder %s4248_s11, 0  ;;  %p3517_p4 = scmp.ge.s32.totalorder %s4248_s11, 2 }
   0x6   : > { %s4296_s16 = scalar_select %p17_p0, %s4244_s10, %s19_s15  }
   0x7   : > { %p28_p3 = por %p27_p2, %p26_p1  ;;  %102 = sbr.rel (%p3517_p4) target bundleno = 24 (0x18), region = 20 }
   0xe   : > { %105 = sbr.rel (!%p28_p3) target bundleno = 24 (0x18), region = 24  ;;  %s107_s17 = sand.u32 (%p28_p3), 1, %s4244_s10  }
   0xf   : > { %s3640_s18 = smul.u32 (%p28_p3), 40, %s4248_s11 }
  0x10   : > { %s4171_s19 = smul.u32 (%p28_p3), 80, %s107_s17 }
  0x11   : > { %s112_s22 = scalar_lea.vmem (%p28_p3), %s5236_s0, %s3640_s18 }
  0x12   : > { %v125_v0 = vld [vmem:[%s112_s22] sm:$0xff] (%p28_p3)  ;;  %v127_v1 = vld [vmem:[%s112_s22 + $0x8] sm:$0xff] (%p28_p3)  ;;  %v129_v2 = vld [vmem:[%s112_s22 + $0x10] sm:$0xff] (%p28_p3)  ;;  %s109_s23 = scalar_lea.vmem (%p28_p3), [#allocation2], %s4171_s19 }
  0x13   : > { %126 = vst [vmem:[%s109_s23] sm:$0xff] (%p28_p3), %v125_v0  ;;  %128 = vst [vmem:[%s109_s23 + $0x8] sm:$0xff] (%p28_p3), %v127_v1  ;;  %v131_v3 = vld [vmem:[%s112_s22 + $0x18] sm:$0xff] (%p28_p3)  ;;  %v133_v4 = vld [vmem:[%s112_s22 + $0x20] sm:$0xff] (%p28_p3) }
  0x14   : > { %130 = vst [vmem:[%s109_s23 + $0x10] sm:$0xff] (%p28_p3), %v129_v2  ;;  %v135_v5 = vld [vmem:[%s112_s22 + $0x50] sm:$0xff] (%p28_p3)  ;;  %132 = vst [vmem:[%s109_s23 + $0x18] sm:$0xff] (%p28_p3), %v131_v3  ;;  %v137_v6 = vld [vmem:[%s112_s22 + $0x58] sm:$0xff] (%p28_p3) }
  0x15   : > { %134 = vst [vmem:[%s109_s23 + $0x20] sm:$0xff] %v133_v4  ;;  %136 = vst [vmem:[%s109_s23 + $0x28] sm:$0xff] %v135_v5  ;;  %v139_v7 = vld [vmem:[%s112_s22 + $0x60] sm:$0xff]  ;;  %v141_v8 = vld [vmem:[%s112_s22 + $0x68] sm:$0xff] }
  0x16   : > { %138 = vst [vmem:[%s109_s23 + $0x30] sm:$0xff] %v137_v6  ;;  %140 = vst [vmem:[%s109_s23 + $0x38] sm:$0xff] %v139_v7  ;;  %v143_v9 = vld [vmem:[%s112_s22 + $0x70] sm:$0xff] }
  0x17   : > { %142 = vst [vmem:[%s109_s23 + $0x40] sm:$0xff] %v141_v8  ;;  %144 = vst [vmem:[%s109_s23 + $0x48] sm:$0xff] %v143_v9 }
  0x18 PF: > { %p3519_p5 = scmp.ge.s32.totalorder %s4248_s11, 1  ;;  %p149_p6 = scmp.lt.s32.totalorder %s4248_s11, 3 }
  0x1a   : > { %p150_p7 = pnand %p3519_p5, %p149_p6 }
  0x1b   : > { %v279_v10 = vld [vmem:[%s5237_s1 + $0x50] sm:$0xff] (!%p150_p7)  ;;  %v277_v11 = vld [vmem:[%s5237_s1 + $0x40] sm:$0xff] (!%p150_p7)  ;;  %s156_s28 = sand.u32 (!%p150_p7), 1, %s4240_s9   ;;  %vm410_vm0 = vcmask (!%p150_p7), 1045504   ;;  %v4250_v12 = vmov (!%p150_p7), 0   ;;  %v280_v13 = vld [vmem:[%s5237_s1 + $0x58] sm:$0xff] (!%p150_p7) }
  0x1c   : > { %153 = sbr.rel (%p150_p7) target bundleno = 2224 (0x8b0), region = 47  ;;  %4203 = vset.pattern.permute.xlu1 (!%p150_p7), %v4250_v12  ;;  %4202 = vset.pattern.permute.xlu0 (!%p150_p7), %v4250_v12  ;;  %v278_v14 = vld [vmem:[%s5237_s1 + $0x48] sm:$0xff] (!%p150_p7)  ;;  %vm4251_vm1 = vmmov (!%p150_p7), 1   ;;  %v4252_v16 = vmov (!%p150_p7), 0.0   ;;  %v752_v35 = vld [vmem:[%s5237_s1 + $0x80] sm:$0xff] (!%p150_p7)  ;;  %vm385_vm3 = vcmask (!%p150_p7), 113664  }
  0x1d   : > { %s4172_s29 = smul.u32 (!%p150_p7), 80, %s156_s28  ;;  %297 = vperm.xlu1 (!%p150_p7), %4203, %v279_v10   ;;  %287 = vperm.xlu0 (!%p150_p7), %4202, %v277_v11   ;;  %vm4319_vm2 = vmpackc.low (!%p150_p7), %vm410_vm0, %vm4251_vm1  ;;  %v753_v34 = vld [vmem:[%s5237_s1 + $0x88] sm:$0xff] (!%p150_p7)  ;;  %v4359_v38 = vld [vmem:[%s5237_s1] sm:$0xff] (!%p150_p7)  ;;  %vm908_vm14 = vcmask (!%p150_p7), 523264   ;;  %vm1236_vm15 = vcmask (!%p150_p7), 261120   ;;  %vm4254_vm0 = vmmov (!%p150_p7), 0  }
  0x1e   : > { %485 = vmatprep.mubr.f32.mxu0 (!%p150_p7), %v4252_v16  ;;  %598 = vmatprep.mubr.f32.mxu1 (!%p150_p7), %v4252_v16  ;;  %v282_v42 = vld [vmem:[%s5237_s1 + $0x68] sm:$0xff] (!%p150_p7)  ;;  %v281_v43 = vld [vmem:[%s5237_s1 + $0x60] sm:$0xff] (!%p150_p7)  ;;  %v755_v48 = vld [vmem:[%s5237_s1 + $0x98] sm:$0xff] (!%p150_p7)  ;;  %p176_p8 = scmp.lt.s32.totalorder (!%p150_p7), %s3514_s12, 1 }
  0x1f   : > { %s4325_s6 = scalar_lea.vmem (!%p150_p7), [#allocation2], %s4172_s29  ;;  %v4381_v46 = vld [vmem:[%s5237_s1 + $0x8] sm:$0xff] (!%p150_p7)  ;;  %v754_v49 = vld [vmem:[%s5237_s1 + $0x90] sm:$0xff] (!%p150_p7)  ;;  %v284_v51 = vld [vmem:[%s5237_s1 + $0x78] sm:$0xff] (!%p150_p7) }
  0x20   : > { %v180_v17 = vld [vmem:[%s4325_s6 + $0x8] sm:$0xff] (!%p150_p7)  ;;  %v185_v18 = vld [vmem:[%s4325_s6 + $0x30] sm:$0x3f] (!%p150_p7)  ;;  %v182_v19 = vld [vmem:[%s4325_s6 + $0x18] sm:$0xff] (!%p150_p7) }
  0x21   : > { %v195_v20 = vrot.slane (!%p150_p7), %v185_v18, 1  ;;  %v3935_v21 = vpack.c.bf16 (!%p150_p7), %v185_v18, %v180_v17  ;;  %v187_v22 = vld [vmem:[%s4325_s6 + $0x40] sm:$0x3f] (!%p150_p7)  ;;  %v184_v24 = vld [vmem:[%s4325_s6 + $0x28] sm:$0x3f] (!%p150_p7)  ;;  %302 = vperm.xlu1 (!%p150_p7), %4203, %v280_v13   ;;  %292 = vperm.xlu0 (!%p150_p7), %4202, %v278_v14   ;;  %v181_v29 = vld [vmem:[%s4325_s6 + $0x10] sm:$0xff] (!%p150_p7) }
  0x22   : > { %v179_v23 = vld [vmem:[%s4325_s6] sm:$0xff] (!%p150_p7)  ;;  %v197_v25 = vrot.slane (!%p150_p7), %v187_v22, 1  ;;  %v3941_v26 = vpack.c.bf16 (!%p150_p7), %v187_v22, %v182_v19  ;;  %v194_v27 = vrot.slane (!%p150_p7), %v184_v24, 1  ;;  %v186_v30 = vld [vmem:[%s4325_s6 + $0x38] sm:$0x3f] (!%p150_p7) }
  0x23   : > { %v4333_v28 = vpack.c.bf16 %v184_v24, %v179_v23  ;;  %v4337_v31 = vsub.f32 %v180_v17, %v195_v20  ;;  %3937 = vmatprep.subr.msk.bf16.mxu0 %vm4319_vm2, %v3935_v21  ;;  %v196_v32 = vrot.slane %v186_v30, 1  ;;  %v3944_v33 = vpack.c.bf16 %v186_v30, %v181_v29  ;;  %v183_v40 = vld [vmem:[%s4325_s6 + $0x20] sm:$0xff]  ;;  %v188_v41 = vld [vmem:[%s4325_s6 + $0x48] sm:$0x3f]  ;;  %s5245_s12 = smov (!%p176_p8, %s3514_s12), 1 }
  0x24   : > { %v4347_v36 = vsub.f32 %v182_v19, %v197_v25  ;;  %3943 = vmatprep.subr.msk.bf16.mxu1 %vm4319_vm2, %v3941_v26  ;;  %v4351_v37 = vsub.f32 %v179_v23, %v194_v27  ;;  %v198_v44 = vrot.slane %v188_v41, 1  ;;  %v3947_v45 = vpack.c.bf16 %v188_v41, %v183_v40  ;;  %v271_v50 = vld [vmem:[%s5237_s1 + $0x10] sm:$0xff]  ;;  %v272_v53 = vld [vmem:[%s5237_s1 + $0x18] sm:$0xff]  ;;  %v757_v54 = vld [vmem:[%s5237_s1 + $0xa8] sm:$0xff]  ;;  %s178_s30 = scalar_lea.vmem %s5238_s2, %s5245_s12 }
  0x25   : > { %3940 = vmatpush1.bf16.msk.msra.mxu0 %vm4319_vm2, %v4333_v28  ;;  %v4361_v39 = vsub.f32 %v181_v29, %v196_v32  ;;  %3946 = vmatpush1.bf16.msk.msra.mxu1 %vm4319_vm2, %v3944_v33  ;;  %v283_v52 = vld [vmem:[%s5237_s1 + $0x70] sm:$0xff]  ;;  %v756_v55 = vld [vmem:[%s5237_s1 + $0xa0] sm:$0xff]  ;;  %v759_v57 = vld [vmem:[%s5237_s1 + $0xb8] sm:$0xff] }
  0x26   : > { %767 = vperm.xlu1 %4203, %v753_v34   ;;  %762 = vperm.xlu0 %4202, %v752_v35   ;;  %v4384_v47 = vsub.f32 %v183_v40, %v198_v44  ;;  %v273_v56 = vld [vmem:[%s5237_s1 + $0x20] sm:$0xff]  ;;  %v758_v58 = vld [vmem:[%s5237_s1 + $0xb0] sm:$0xff]  ;;  %v274_v59 = vld [vmem:[%s5237_s1 + $0x28] sm:$0xff]  ;;  %v209_v40 = vmul.f32 %v4351_v37, %v4351_v37 }
  0x27   : > { %3949 = vmatprep.subr.msk.bf16.mxu0 %vm4319_vm2, %v3947_v45  ;;  %v885_v60 = vld [vmem:[%s5237_s1 + $0xe8] sm:$0xff]  ;;  %v884_v61 = vld [vmem:[%s5237_s1 + $0xe0] sm:$0xff]  ;;  %v275_v62 = vld [vmem:[%s5237_s1 + $0x30] sm:$0xff]  ;;  %v211_v41 = vmul.f32 %v4361_v39, %v4361_v39 }
  0x28   : > { %3522 = vmatmul.mubr.msk.f32.vlgmr.msra.gmra.mrb[0].mxu0 %vm385_vm3, %v4359_v38  ;;  %3532 = vmatmul.mubr.msk.f32.vlgmr.msra.gmra.mrb[0].mxu1 %vm385_vm3, %v4359_v38  ;;  %v887_v63 = vld [vmem:[%s5237_s1 + $0xf8] sm:$0xff]  ;;  %v886_v0 = vld [vmem:[%s5237_s1 + $0xf0] sm:$0xff]  ;;  %v1213_v2 = vld [vmem:[%s5237_s1 + $0x128] sm:$0xff]  ;;  %v213_v44 = vmul.f32 %v4384_v47, %v4384_v47 }
  0x29   : > { %491 = vmatprep.mubr.f32.mxu0 %v4252_v16  ;;  %604 = vmatprep.mubr.f32.mxu1 %v4252_v16  ;;  %v276_v1 = vld [vmem:[%s5237_s1 + $0x38] sm:$0xff]  ;;  %v1212_v3 = vld [vmem:[%s5237_s1 + $0x120] sm:$0xff]  ;;  %v1214_v5 = vld [vmem:[%s5237_s1 + $0x130] sm:$0xff] }
  0x2a   : > { %312 = vperm.xlu1 %4203, %v282_v42   ;;  %307 = vperm.xlu0 %4202, %v281_v43   ;;  %v1215_v4 = vld [vmem:[%s5237_s1 + $0x138] sm:$0xff]  ;;  %v1856_v6 = vld [vmem:[%s5237_s1 + $0x1c8] sm:$0xff]  ;;  %v1855_v7 = vld [vmem:[%s5237_s1 + $0x1c0] sm:$0xff]  ;;  %v212_v42 = vmul.f32 %v4347_v36, %v4347_v36 }
  0x2b   : > { %3952 = vmatpush3.bf16.msk.msra.mxu0 %vm4319_vm2, %v3947_v45  ;;  %v1858_v8 = vld [vmem:[%s5237_s1 + $0x1d8] sm:$0xff]  ;;  %v1857_v9 = vld [vmem:[%s5237_s1 + $0x1d0] sm:$0xff]  ;;  %v2280_v10 = vld [vmem:[%s5237_s1 + $0x208] sm:$0xff]  ;;  %v219_v45 = vrot.slane %v209_v40, 1 }
  0x2c   : > { %3523 = vmatmul.mubr.msk.f32.gmra.mrb[2].mxu0 %vm385_vm3, %v4381_v46  ;;  %3533 = vmatmul.mubr.msk.f32.gmra.mrb[2].mxu1 %vm385_vm3, %v4381_v46  ;;  %v2279_v11 = vld [vmem:[%s5237_s1 + $0x200] sm:$0xff]  ;;  %v2282_v12 = vld [vmem:[%s5237_s1 + $0x218] sm:$0xff]  ;;  %v2281_v13 = vld [vmem:[%s5237_s1 + $0x210] sm:$0xff] }
  0x2d   : > { %497 = vmatprep.mubr.f32.mxu0 %v4252_v16  ;;  %610 = vmatprep.mubr.f32.mxu1 %v4252_v16  ;;  %v1532_v14 = vld [vmem:[%s5237_s1 + $0x160] sm:$0xff]  ;;  %v2599_v17 = vld [vmem:[%s5237_s1 + $0x228] sm:$0x1]  ;;  %v1534_v18 = vld [vmem:[%s5237_s1 + $0x170] sm:$0xff] }
  0x2e   : > { %777 = vperm.xlu1 %4203, %v755_v48   ;;  %772 = vperm.xlu0 %4202, %v754_v49   ;;  %v1533_v19 = vld [vmem:[%s5237_s1 + $0x168] sm:$0xff]  ;;  %v3187_v20 = vld [vmem:[%s5237_s1 + $0x2b0] sm:$0xff]  ;;  %v1535_v21 = vld [vmem:[%s5237_s1 + $0x178] sm:$0xff]  ;;  %v222_v48 = vrot.slane %v212_v42, 1 }
  0x2f   : > { %v3189_v22 = vld [vmem:[%s5237_s1 + $0x2c0] sm:$0xff]  ;;  %v3188_v23 = vld [vmem:[%s5237_s1 + $0x2b8] sm:$0xff]  ;;  %v3191_v24 = vld [vmem:[%s5237_s1 + $0x2d0] sm:$0xff] }
  0x30   : > { %3524 = vmatmul.mubr.msk.f32.gmra.mrb[4].mxu0 %vm385_vm3, %v271_v50  ;;  %3534 = vmatmul.mubr.msk.f32.gmra.mrb[4].mxu1 %vm385_vm3, %v271_v50  ;;  %v3190_v25 = vld [vmem:[%s5237_s1 + $0x2c8] sm:$0xff]  ;;  %v3193_v26 = vld [vmem:[%s5237_s1 + $0x2e0] sm:$0xff]  ;;  %v3192_v27 = vld [vmem:[%s5237_s1 + $0x2d8] sm:$0xff] }
  0x31   : > { %503 = vmatprep.mubr.f32.mxu0 %v4252_v16  ;;  %616 = vmatprep.mubr.f32.mxu1 %v4252_v16  ;;  %v3255_v29 = vld [vmem:[%s5237_s1 + $0x310] sm:$0xff]  ;;  %v3194_v30 = vld [vmem:[%s5237_s1 + $0x2e8] sm:$0xff]  ;;  %v3257_v32 = vld [vmem:[%s5237_s1 + $0x320] sm:$0xff] }
  0x32   : > { %322 = vperm.xlu1 %4203, %v284_v51   ;;  %317 = vperm.xlu0 %4202, %v283_v52   ;;  %v3256_v33 = vld [vmem:[%s5237_s1 + $0x318] sm:$0xff]  ;;  %v3258_v35 = vld [vmem:[%s5237_s1 + $0x328] sm:$0xff]  ;;  %v229_v51 = vadd.f32 %v219_v45, %v209_v40  ;;  %v232_v52 = vadd.f32 %v222_v48, %v212_v42 }
  0x33   : > { %v3381_v34 = vld [vmem:[%s5237_s1 + $0x338] sm:$0x1]  ;;  %v2928_v15 = vld [vmem:[%s5237_s1 + $0x2a8] sm:$0xff] }
  0x34   : > { %3525 = vmatmul.mubr.msk.f32.gmra.mrb[6].mxu0 %vm385_vm3, %v272_v53  ;;  %3535 = vmatmul.mubr.msk.f32.gmra.mrb[6].mxu1 %vm385_vm3, %v272_v53  ;;  %vm236_vm4 = vcmp.eq.f32.partialorder %v229_v51, inf  ;;  %vm257_vm8 = vcmp.eq.f32.partialorder %v232_v52, inf  ;;  %vm238_vm9 = vcmp.eq.f32.partialorder %v229_v51, 0.0  ;;  %vm259_vm12 = vcmp.eq.f32.partialorder %v232_v52, 0.0 }
  0x35   : > { %509 = vmatprep.mubr.f32.mxu0 %v4252_v16  ;;  %622 = vmatprep.mubr.f32.mxu1 %v4252_v16 }
  0x36   : > { %787 = vperm.xlu1 %4203, %v757_v54   ;;  %782 = vperm.xlu0 %4202, %v756_v55  }
  0x38   : > { %3526 = vmatmul.mubr.msk.f32.gmra.mrb[8].mxu0 %vm385_vm3, %v273_v56  ;;  %3536 = vmatmul.mubr.msk.f32.gmra.mrb[8].mxu1 %vm385_vm3, %v273_v56 }
  0x39   : > { %515 = vmatprep.mubr.f32.mxu0 %v4252_v16  ;;  %628 = vmatprep.mubr.f32.mxu1 %v4252_v16 }
  0x3a   : > { %797 = vperm.xlu1 %4203, %v759_v57   ;;  %792 = vperm.xlu0 %4202, %v758_v58  }
  0x3c   : > { %3527 = vmatmul.mubr.msk.f32.gmra.mrb[10].mxu0 %vm385_vm3, %v274_v59  ;;  %3537 = vmatmul.mubr.msk.f32.gmra.mrb[10].mxu1 %vm385_vm3, %v274_v59 }
  0x3d   : > { %521 = vmatprep.mubr.f32.mxu0 %v4252_v16  ;;  %634 = vmatprep.mubr.f32.mxu1 %v4252_v16 }
  0x3e   : > { %895 = vperm.xlu1 %4203, %v885_v60   ;;  %890 = vperm.xlu0 %4202, %v884_v61  }
  0x40   : > { %3528 = vmatmul.mubr.msk.f32.gmra.mrb[12].mxu0 %vm385_vm3, %v275_v62  ;;  %3538 = vmatmul.mubr.msk.f32.gmra.mrb[12].mxu1 %vm385_vm3, %v275_v62 }
  0x41   : > { %527 = vmatprep.mubr.f32.mxu0 %v4252_v16  ;;  %640 = vmatprep.mubr.f32.mxu1 %v4252_v16 }
  0x42   : > { %905 = vperm.xlu1 %4203, %v887_v63   ;;  %900 = vperm.xlu0 %4202, %v886_v0   ;;  %v239_v63 = vand.u32 2147483648, %v229_v51 }
  0x44   : > { %3529 = vmatmul.mubr.msk.f32.gmra.mrb[14].mxu0 %vm385_vm3, %v276_v1  ;;  %3539 = vmatmul.mubr.msk.f32.gmra.mrb[14].mxu1 %vm385_vm3, %v276_v1 }
  0x45   : > { %3751 = vmatprep.mubr.msk.f32.mxu0 %vm385_vm3, %v4359_v38  ;;  %985 = vmatprep.mubr.f32.mxu1 %v4252_v16  ;;  %v210_v38 = vmul.f32 %v4337_v31, %v4337_v31 }
  0x46   : > { %1223 = vperm.xlu1 %4203, %v1213_v2   ;;  %1218 = vperm.xlu0 %4202, %v1212_v3  }
  0x47   : > { %v220_v43 = vrot.slane %v210_v38, 1 }
  0x48   : > { %3752 = vmatmul.mubr.msk.f32.vlgmr.msra.gmra.mrb[16].mxu0 %vm385_vm3, %v4381_v46  ;;  %v221_v46 = vrot.slane %v211_v41, 1 }
  0x49   : > { %3754 = vmatprep.mubr.msk.f32.mxu0 %vm385_vm3, %v271_v50  ;;  %v230_v49 = vadd.f32 %v220_v43, %v210_v38  ;;  %v223_v50 = vrot.slane %v213_v44, 1 }
  0x4a   : > { %1233 = vperm.xlu1 %4203, %v1215_v4   ;;  %1228 = vperm.xlu0 %4202, %v1214_v5   ;;  %v231_v31 = vadd.f32 %v221_v46, %v211_v41  ;;  %v260_v5 = vand.u32 2147483648, %v232_v52 }
  0x4b   : > { %4204 = vrsqrt.f32 %v230_v49  ;;  %v233_v37 = vadd.f32 %v223_v50, %v213_v44  ;;  %vm243_vm5 = vcmp.eq.f32.partialorder %v230_v49, inf  ;;  %vm245_vm6 = vcmp.eq.f32.partialorder %v230_v49, 0.0 }
  0x4c   : > { %3755 = vmatmul.mubr.msk.f32.gmra.mrb[18].mxu0 %vm385_vm3, %v272_v53  ;;  %4206 = vrsqrt.f32 %v229_v51  ;;  %v325_v53 = vlaneseq  ;;  %vm250_vm7 = vcmp.eq.f32.partialorder %v231_v31, inf  ;;  %v253_v3 = vand.u32 2147483648, %v231_v31 }
  0x4d   : > { %3757 = vmatprep.mubr.msk.f32.mxu0 %vm385_vm3, %v273_v56  ;;  %4208 = vrsqrt.f32 %v231_v31  ;;  %vm264_vm10 = vcmp.eq.f32.partialorder %v233_v37, inf  ;;  %vm252_vm11 = vcmp.eq.f32.partialorder %v231_v31, 0.0  ;;  %vm266_vm13 = vcmp.eq.f32.partialorder %v233_v37, 0.0 }
  0x4e   : > { %1866 = vperm.xlu1 %4203, %v1856_v6   ;;  %1861 = vperm.xlu0 %4202, %v1855_v7   ;;  %4210 = vrsqrt.f32 %v232_v52 }
  0x4f   : > { %4212 = vrsqrt.f32 %v233_v37 }
  0x50   : > { %3758 = vmatmul.mubr.msk.f32.gmra.mrb[20].mxu0 %vm385_vm3, %v274_v59  ;;  %v326_v59 = vshrl.u32 %v325_v53, 7 }
  0x51   : > { %3760 = vmatprep.mubr.msk.f32.mxu0 %vm385_vm3, %v275_v62  ;;  %v246_v62 = vand.u32 2147483648, %v230_v49 }
  0x52   : > { %1876 = vperm.xlu1 %4203, %v1858_v8   ;;  %1871 = vperm.xlu0 %4202, %v1857_v9   ;;  %v4588_v8 = vsub.s32 0, %v326_v59 }
  0x54   : > { %3761 = vmatmul.mubr.msk.f32.gmra.mrb[22].mxu0 %vm385_vm3, %v276_v1 }
  0x55   : > { %1074 = vmatprep.mubr.f32.mxu0 %v4252_v16  ;;  %v4205_v39 = vpop.eup %4204 }
  0x56   : > { %2290 = vperm.xlu1 %4203, %v2280_v10   ;;  %2285 = vperm.xlu0 %4202, %v2279_v11   ;;  %v4207_v36 = vpop.eup %4206  ;;  %v242_v58 = vmul.f32 %v4205_v39, %v230_v49  ;;  %v267_v10 = vand.u32 2147483648, %v233_v37 }
  0x57   : > { %v4209_v54 = vpop.eup %4208  ;;  %v235_v57 = vmul.f32 %v4207_v36, %v229_v51 }
  0x58   : > { %v4211_v55 = vpop.eup %4210  ;;  %v249_v60 = vmul.f32 %v4209_v54, %v231_v31  ;;  %v244_v4 = vsel %vm243_vm5, %v230_v49, %v242_v58 }
  0x59   : > { %v4213_v56 = vpop.eup %4212  ;;  %v256_v61 = vmul.f32 %v4211_v55, %v232_v52  ;;  %v237_v2 = vsel %vm236_vm4, %v229_v51, %v235_v57 }
  0x5a   : > { %2300 = vperm.xlu1 %4203, %v2282_v12   ;;  %2295 = vperm.xlu0 %4202, %v2281_v13   ;;  %v263_v0 = vmul.f32 %v4213_v56, %v233_v37  ;;  %v251_v6 = vsel %vm250_vm7, %v231_v31, %v249_v60  ;;  %v240_v11 = vsel %vm238_vm9, %v239_v63, %v237_v2 }
  0x5b   : > { %v258_v9 = vsel %vm257_vm8, %v232_v52, %v256_v61  ;;  %v247_v13 = vsel %vm245_vm6, %v246_v62, %v244_v4 }
  0x5c   : > { %v265_v12 = vsel %vm264_vm10, %v233_v37, %v263_v0 }
  0x5e   : > { %1538 = vperm.xlu1 %4203, %v1532_v14   ;;  %2602 = vperm.xlu0 %4202, %v2599_v17   ;;  %v254_v14 = vsel %vm252_vm11, %v253_v3, %v251_v6  ;;  %v261_v17 = vsel %vm259_vm12, %v260_v5, %v258_v9 }
  0x62   : > { %1548 = vperm.xlu1 %4203, %v1534_v18   ;;  %1543 = vperm.xlu0 %4202, %v1533_v19   ;;  %v4594_v19 = vrot.slane %v240_v11, %v4588_v8 }
  0x66   : > { %3197 = vperm.xlu1 %4203, %v3187_v20   ;;  %1553 = vperm.xlu0 %4202, %v1535_v21   ;;  %v268_v20 = vsel %vm266_vm13, %v267_v10, %v265_v12  ;;  %v4597_v21 = vrot.slane %v247_v13, %v4588_v8 }
  0x6a   : > { %3207 = vperm.xlu1 %4203, %v3189_v22   ;;  %3202 = vperm.xlu0 %4202, %v3188_v23   ;;  %v4600_v22 = vrot.slane %v254_v14, %v4588_v8 }
  0x6e   : > { %3217 = vperm.xlu1 %4203, %v3191_v24   ;;  %3212 = vperm.xlu0 %4202, %v3190_v25   ;;  %v4605_v24 = vrot.slane %v261_v17, %v4588_v8  ;;  %v4608_v25 = vrot.slane %v268_v20, %v4588_v8 }
  0x72   : > { %3227 = vperm.xlu1 %4203, %v3193_v26   ;;  %3222 = vperm.xlu0 %4202, %v3192_v27  }
  0x76   : > { %3261 = vperm.xlu1 %4203, %v3255_v29   ;;  %3232 = vperm.xlu0 %4202, %v3194_v30  }
  0x7a   : > { %3271 = vperm.xlu1 %4203, %v3257_v32   ;;  %3266 = vperm.xlu0 %4202, %v3256_v33  }
  0x7e   : > { %3384 = vperm.xlu1 %4203, %v3381_v34   ;;  %3276 = vperm.xlu0 %4202, %v3258_v35  }
  0x9c   : > { %v288_v47 = vpop.permute.xlu0 %287  ;;  %v4584_v1 = vpop.permute.xlu1 %297 }
  0x9d   : > { %v345_v26 = vmul.f32 %v4594_v19, %v288_v47  ;;  %v347_v29 = vmul.f32 %v4600_v22, %v288_v47  ;;  %v346_v30 = vmul.f32 %v4597_v21, %v288_v47  ;;  %v348_v32 = vmul.f32 %v4605_v24, %v288_v47 }
  0x9e   : > { %v355_v33 = vmul.f32 %v4594_v19, %v4584_v1  ;;  %v357_v34 = vmul.f32 %v4600_v22, %v4584_v1  ;;  %v356_v41 = vmul.f32 %v4597_v21, %v4584_v1  ;;  %v358_v42 = vmul.f32 %v4605_v24, %v4584_v1 }
  0x9f   : > { %v4629_v43 = vmul.f32 %v4608_v25, %v288_v47 }
  0xa0   : > { %v4586_v7 = vpop.permute.xlu0 %292  ;;  %v4591_v18 = vpop.permute.xlu1 %302 }
  0xa1   : > { %v350_v40 = vmul.f32 %v4594_v19, %v4586_v7  ;;  %v352_v48 = vmul.f32 %v4600_v22, %v4586_v7  ;;  %v351_v49 = vmul.f32 %v4597_v21, %v4586_v7  ;;  %v353_v50 = vmul.f32 %v4605_v24, %v4586_v7 }
  0xa2   : > { %v360_v37 = vmul.f32 %v4594_v19, %v4591_v18  ;;  %v362_v39 = vmul.f32 %v4600_v22, %v4591_v18  ;;  %v361_v53 = vmul.f32 %v4597_v21, %v4591_v18  ;;  %v4645_v54 = vmul.f32 %v4605_v24, %v4591_v18 }
  0xa5   : > { %v4602_v23 = vpop.permute.xlu0 %762  ;;  %v4611_v27 = vpop.permute.xlu1 %767 }
  0xa9   : > { %v4620_v35 = vpop.permute.xlu0 %307  ;;  %v4651_v47 = vpop.permute.xlu1 %312 }
  0xaa   : > { %v4649_v55 = vmul.f32 %v4594_v19, %v4620_v35  ;;  %v4657_v59 = vmul.f32 %v4600_v22, %v4620_v35  ;;  %v4661_v60 = vmul.f32 %v4597_v21, %v4620_v35  ;;  %v4666_v2 = vmul.f32 %v4605_v24, %v4620_v35 }
  0xab   : > { %v4670_v3 = vmul.f32 %v4594_v19, %v4651_v47  ;;  %v4676_v10 = vmul.f32 %v4600_v22, %v4651_v47  ;;  %v4680_v11 = vmul.f32 %v4597_v21, %v4651_v47  ;;  %v4686_v17 = vmul.f32 %v4605_v24, %v4651_v47 }
  0xad   : > { %v4672_v4 = vpop.permute.xlu0 %772 }
  0xfb   : > { %v487_v38 = vpop.f32.mrb[0].mxu0  ;;  %v600_v45 = vpop.f32.mrb[0].mxu1 }
  0xfc   : > { %v488_v44 = vadd.f32 %v487_v38, %v345_v26  ;;  %v489_v46 = vpop.f32.mrb[1].mxu0  ;;  %v601_v51 = vadd.f32 %v600_v45, %v347_v29  ;;  %v602_v52 = vpop.f32.mrb[1].mxu1 }
  0xfd   : > { %v490_v31 = vadd.f32 %v489_v46, %v346_v30  ;;  %v603_v36 = vadd.f32 %v602_v52, %v348_v32 }
  0xfe   : > { %v800_v56 = vadd.f32 %v4602_v23, %v488_v44  ;;  %v802_v57 = vadd.f32 %v4602_v23, %v601_v51 }
  0xff   : > { %v493_v58 = vpop.f32.mrb[2].mxu0  ;;  %v801_v61 = vadd.f32 %v4602_v23, %v490_v31  ;;  %v606_v63 = vpop.f32.mrb[2].mxu1  ;;  %v803_v12 = vadd.f32 %v4602_v23, %v603_v36 }
 0x100   : > { %v494_v62 = vadd.f32 %v493_v58, %v350_v40  ;;  %v495_v0 = vpop.f32.mrb[3].mxu0  ;;  %v607_v5 = vadd.f32 %v606_v63, %v352_v48  ;;  %v608_v9 = vpop.f32.mrb[3].mxu1  ;;  %v840_v20 = vmax.f32 %v800_v56, 0.0  ;;  %v842_v26 = vmax.f32 %v802_v57, 0.0 }
 0x101   : > { %v496_v6 = vadd.f32 %v495_v0, %v351_v49  ;;  %v609_v14 = vadd.f32 %v608_v9, %v353_v50  ;;  %v841_v38 = vmax.f32 %v801_v61, 0.0  ;;  %v4691_v49 = vpop.permute.xlu1 %777  ;;  %v843_v56 = vmax.f32 %v803_v12, 0.0  ;;  %v4693_v63 = vpop.permute.xlu0 %317 }
 0x102   : > { %v805_v13 = vadd.f32 %v4611_v27, %v494_v62  ;;  %v807_v29 = vadd.f32 %v4611_v27, %v607_v5  ;;  %v4700_v12 = vmul.f32 %v4594_v19, %v4693_v63 }
 0x103   : > { %v806_v30 = vadd.f32 %v4611_v27, %v496_v6  ;;  %v499_v32 = vpop.f32.mrb[4].mxu0  ;;  %v808_v44 = vadd.f32 %v4611_v27, %v609_v14  ;;  %v612_v46 = vpop.f32.mrb[4].mxu1 }
 0x104   : > { %v845_v40 = vmax.f32 %v805_v13, 0.0  ;;  %v500_v45 = vadd.f32 %v499_v32, %v355_v33  ;;  %v501_v48 = vpop.f32.mrb[5].mxu0  ;;  %v847_v50 = vmax.f32 %v807_v29, 0.0  ;;  %v613_v31 = vadd.f32 %v612_v46, %v357_v34  ;;  %v614_v36 = vpop.f32.mrb[5].mxu1 }
 0x105   : > { %v846_v51 = vmax.f32 %v806_v30, 0.0  ;;  %v502_v52 = vadd.f32 %v501_v48, %v356_v41  ;;  %v848_v58 = vmax.f32 %v808_v44, 0.0  ;;  %v615_v62 = vadd.f32 %v614_v36, %v358_v42 }
 0x106   : > { %v3955_v57 = vpack.c.bf16 %v845_v40, %v840_v20  ;;  %v3971_v61 = vpack.c.bf16 %v847_v50, %v842_v26  ;;  %v810_v0 = vadd.f32 %v4672_v4, %v500_v45  ;;  %v812_v33 = vadd.f32 %v4672_v4, %v613_v31 }
 0x107   : > { %v505_v5 = vpop.f32.mrb[6].mxu0  ;;  %v3953_v6 = vpack.c.bf16 %v846_v51, %v841_v38  ;;  %v811_v9 = vadd.f32 %v4672_v4, %v502_v52  ;;  %v618_v14 = vpop.f32.mrb[6].mxu1  ;;  %v3969_v41 = vpack.c.bf16 %v848_v58, %v843_v56  ;;  %v4704_v26 = vmul.f32 %v4600_v22, %v4693_v63 }
 0x108   : > { %v506_v13 = vadd.f32 %v505_v5, %v360_v37  ;;  %v507_v34 = vpop.f32.mrb[7].mxu0  ;;  %v619_v42 = vadd.f32 %v618_v14, %v362_v39  ;;  %v620_v29 = vpop.f32.mrb[7].mxu1  ;;  %v4708_v30 = vmul.f32 %v4597_v21, %v4693_v63  ;;  %v813_v37 = vadd.f32 %v4672_v4, %v615_v62 }
 0x109   : > { %v508_v20 = vadd.f32 %v507_v34, %v361_v53  ;;  %3954 = vmatprep.subr.bf16.mxu1 %v3953_v6  ;;  %v621_v38 = vadd.f32 %v620_v29, %v4645_v54  ;;  %3970 = vmatprep.subr.bf16.mxu0 %v3969_v41  ;;  %v4713_v39 = vpop.permute.xlu1 %322  ;;  %v850_v53 = vmax.f32 %v810_v0, 0.0  ;;  %v852_v40 = vmax.f32 %v812_v33, 0.0  ;;  %v4721_v0 = vpop.permute.xlu0 %782 }
 0x10a   : > { %v815_v32 = vadd.f32 %v4691_v49, %v506_v13  ;;  %3956 = vmatpush1.bf16.msra.mxu1 %v3955_v57  ;;  %v817_v44 = vadd.f32 %v4691_v49, %v619_v42  ;;  %3972 = vmatpush1.bf16.msra.mxu0 %v3971_v61  ;;  %v851_v48 = vmax.f32 %v811_v9, 0.0  ;;  %v853_v33 = vmax.f32 %v813_v37, 0.0 }
 0x10b   : > { %v816_v45 = vadd.f32 %v4691_v49, %v508_v20  ;;  %v511_v46 = vpop.f32.mrb[8].mxu0  ;;  %v818_v51 = vadd.f32 %v4691_v49, %v621_v38  ;;  %v624_v52 = vpop.f32.mrb[8].mxu1  ;;  %v378_v29 = vmul.f32 %v4605_v24, %v4693_v63 }
 0x10c   : > { %v855_v50 = vmax.f32 %v815_v32, 0.0  ;;  %v512_v31 = vadd.f32 %v511_v46, %v4649_v55  ;;  %v513_v54 = vpop.f32.mrb[9].mxu0  ;;  %v857_v36 = vmax.f32 %v817_v44, 0.0  ;;  %v625_v57 = vadd.f32 %v624_v52, %v4657_v59  ;;  %v626_v62 = vpop.f32.mrb[9].mxu1 }
 0x10d   : > { %v856_v56 = vmax.f32 %v816_v45, 0.0  ;;  %v514_v58 = vadd.f32 %v513_v54, %v4661_v60  ;;  %v858_v5 = vmax.f32 %v818_v51, 0.0  ;;  %v627_v6 = vadd.f32 %v626_v62, %v4666_v2  ;;  %v4730_v37 = vpop.permute.xlu1 %787  ;;  %v4747_v62 = vpop.permute.xlu0 %792 }
 0x10e   : > { %v3959_v61 = vpack.c.bf16 %v855_v50, %v850_v53  ;;  %v3975_v9 = vpack.c.bf16 %v857_v36, %v852_v40  ;;  %v820_v13 = vadd.f32 %v4721_v0, %v512_v31  ;;  %v822_v55 = vadd.f32 %v4721_v0, %v625_v57 }
 0x10f   : > { %v517_v14 = vpop.f32.mrb[10].mxu0  ;;  %v3957_v34 = vpack.c.bf16 %v856_v56, %v851_v48  ;;  %v821_v41 = vadd.f32 %v4721_v0, %v514_v58  ;;  %v630_v60 = vpop.f32.mrb[10].mxu1  ;;  %v3973_v20 = vpack.c.bf16 %v858_v5, %v853_v33  ;;  %v380_v53 = vmul.f32 %v4594_v19, %v4713_v39 }
 0x110   : > { %v518_v59 = vadd.f32 %v517_v14, %v4670_v3  ;;  %v519_v42 = vpop.f32.mrb[11].mxu0  ;;  %v631_v2 = vadd.f32 %v630_v60, %v4676_v10  ;;  %v632_v38 = vpop.f32.mrb[11].mxu1  ;;  %v382_v3 = vmul.f32 %v4600_v22, %v4713_v39  ;;  %v823_v40 = vadd.f32 %v4721_v0, %v627_v6 }
 0x111   : > { %v520_v32 = vadd.f32 %v519_v42, %v4680_v11  ;;  %3958 = vmatprep.subr.bf16.mxu1 %v3957_v34  ;;  %v633_v45 = vadd.f32 %v632_v38, %v4686_v17  ;;  %3974 = vmatprep.subr.bf16.mxu0 %v3973_v20  ;;  %v860_v46 = vmax.f32 %v820_v13, 0.0  ;;  %v862_v10 = vmax.f32 %v822_v55, 0.0  ;;  %v4755_v42 = vpop.permute.xlu1 %797 }
 0x112   : > { %v825_v44 = vadd.f32 %v4730_v37, %v518_v59  ;;  %3960 = vmatpush1.bf16.msra.mxu1 %v3959_v61  ;;  %v827_v11 = vadd.f32 %v4730_v37, %v631_v2  ;;  %3976 = vmatpush1.bf16.msra.mxu0 %v3975_v9  ;;  %v861_v19 = vmax.f32 %v821_v41, 0.0  ;;  %v863_v33 = vmax.f32 %v823_v40, 0.0 }
 0x113   : > { %v826_v48 = vadd.f32 %v4730_v37, %v520_v32  ;;  %v523_v50 = vpop.f32.mrb[12].mxu0  ;;  %v828_v22 = vadd.f32 %v4730_v37, %v633_v45  ;;  %v636_v52 = vpop.f32.mrb[12].mxu1  ;;  %v383_v59 = vmul.f32 %v4605_v24, %v4713_v39 }
 0x114   : > { %v865_v51 = vmax.f32 %v825_v44, 0.0  ;;  %v524_v31 = vadd.f32 %v523_v50, %v4700_v12  ;;  %v525_v54 = vpop.f32.mrb[13].mxu0  ;;  %v867_v36 = vmax.f32 %v827_v11, 0.0  ;;  %v637_v56 = vadd.f32 %v636_v52, %v4704_v26  ;;  %v638_v58 = vpop.f32.mrb[13].mxu1 }
 0x115   : > { %v866_v17 = vmax.f32 %v826_v48, 0.0  ;;  %v526_v57 = vadd.f32 %v525_v54, %v4708_v30  ;;  %v868_v5 = vmax.f32 %v828_v22, 0.0  ;;  %v639_v6 = vadd.f32 %v638_v58, %v378_v29 }
 0x116   : > { %v3963_v61 = vpack.c.bf16 %v865_v51, %v860_v46  ;;  %v3979_v9 = vpack.c.bf16 %v867_v36, %v862_v10  ;;  %v830_v13 = vadd.f32 %v4747_v62, %v524_v31  ;;  %v381_v12 = vmul.f32 %v4597_v21, %v4713_v39 }
 0x117   : > { %v529_v55 = vpop.f32.mrb[14].mxu0  ;;  %v3961_v14 = vpack.c.bf16 %v866_v17, %v861_v19  ;;  %v832_v34 = vadd.f32 %v4747_v62, %v637_v56  ;;  %v642_v41 = vpop.f32.mrb[14].mxu1  ;;  %v3977_v60 = vpack.c.bf16 %v868_v5, %v863_v33  ;;  %v831_v20 = vadd.f32 %v4747_v62, %v526_v57 }
 0x118   : > { %v530_v26 = vadd.f32 %v529_v55, %v380_v53  ;;  %v531_v30 = vpop.f32.mrb[15].mxu0  ;;  %v643_v29 = vadd.f32 %v642_v41, %v382_v3  ;;  %v644_v32 = vpop.f32.mrb[15].mxu1  ;;  %v354_v21 = vmul.f32 %v4608_v25, %v4586_v7  ;;  %v833_v38 = vadd.f32 %v4747_v62, %v639_v6 }
 0x119   : > { %v532_v2 = vadd.f32 %v531_v30, %v381_v12  ;;  %3962 = vmatprep.subr.bf16.mxu1 %v3961_v14  ;;  %v645_v40 = vadd.f32 %v644_v32, %v383_v59  ;;  %3978 = vmatprep.subr.bf16.mxu0 %v3977_v60  ;;  %v870_v24 = vmax.f32 %v830_v13, 0.0  ;;  %v364_v46 = vmul.f32 %v4608_v25, %v4591_v18 }
 0x11a   : > { %v835_v53 = vadd.f32 %v4755_v42, %v530_v26  ;;  %3964 = vmatpush1.bf16.msra.mxu1 %v3963_v61  ;;  %v837_v44 = vadd.f32 %v4755_v42, %v643_v29  ;;  %3980 = vmatpush1.bf16.msra.mxu0 %v3979_v9  ;;  %v872_v10 = vmax.f32 %v832_v34, 0.0  ;;  %v871_v19 = vmax.f32 %v831_v20, 0.0 }
 0x11b   : > { %v836_v45 = vadd.f32 %v4755_v42, %v532_v2  ;;  %v3753_v3 = vpop.f32.mrb[16].mxu0  ;;  %v838_v7 = vadd.f32 %v4755_v42, %v645_v40  ;;  %v873_v52 = vmax.f32 %v833_v38, 0.0  ;;  %v359_v58 = vmul.f32 %v4608_v25, %v4584_v1 }
 0x11c   : > { %v875_v11 = vmax.f32 %v835_v53, 0.0  ;;  %v719_v48 = vadd.f32 %v3753_v3, %v354_v21  ;;  %v713_v50 = vpop.f32.mrb[17].mxu0  ;;  %v877_v51 = vmax.f32 %v837_v44, 0.0  ;;  %v369_v14 = vmul.f32 %v4608_v25, %v4620_v35  ;;  %v881_v35 = vld [vmem:[%s5237_s1 + $0xc8] sm:$0xff]  ;;  %v4818_v44 = vpop.permute.xlu0 %890 }
 0x11d   : > { %v876_v22 = vmax.f32 %v836_v45, 0.0  ;;  %v714_v31 = vadd.f32 %v713_v50, %v4629_v43  ;;  %v878_v36 = vmax.f32 %v838_v7, 0.0  ;;  %v379_v29 = vmul.f32 %v4608_v25, %v4693_v63 }
 0x11e   : > { %v3967_v54 = vpack.c.bf16 %v875_v11, %v870_v24  ;;  %v809_v17 = vadd.f32 %v4611_v27, %v719_v48  ;;  %v3983_v56 = vpack.c.bf16 %v877_v51, %v872_v10  ;;  %v374_v27 = vmul.f32 %v4608_v25, %v4651_v47 }
 0x11f   : > { %v804_v57 = vadd.f32 %v4602_v23, %v714_v31  ;;  %v3756_v18 = vpop.f32.mrb[18].mxu0  ;;  %v3965_v33 = vpack.c.bf16 %v876_v22, %v871_v19  ;;  %v3981_v9 = vpack.c.bf16 %v878_v36, %v873_v52  ;;  %v880_v23 = vld [vmem:[%s5237_s1 + $0xc0] sm:$0xff]  ;;  %v896_v19 = vpop.permute.xlu1 %895 }
 0x120   : > { %v849_v61 = vmax.f32 %v809_v17, 0.0  ;;  %v729_v5 = vadd.f32 %v3756_v18, %v364_v46  ;;  %v723_v6 = vpop.f32.mrb[19].mxu0 }
 0x121   : > { %v844_v13 = vmax.f32 %v804_v57, 0.0  ;;  %v724_v55 = vadd.f32 %v723_v6, %v359_v58  ;;  %3966 = vmatprep.subr.bf16.mxu1 %v3965_v33  ;;  %3982 = vmatprep.subr.bf16.mxu0 %v3981_v9 }
 0x122   : > { %v819_v43 = vadd.f32 %v4691_v49, %v729_v5  ;;  %3968 = vmatpush1.bf16.msra.mxu1 %v3967_v54  ;;  %3984 = vmatpush1.bf16.msra.mxu0 %v3983_v56  ;;  %v4824_v5 = vpop.permute.xlu0 %900 }
 0x123   : > { %v814_v1 = vadd.f32 %v4672_v4, %v724_v55  ;;  %v3759_v12 = vpop.f32.mrb[20].mxu0  ;;  %v3985_v34 = vpack.c.bf16 %v849_v61, %v844_v13  ;;  %v384_v4 = vmul.f32 %v4608_v25, %v4713_v39  ;;  %v882_v25 = vld [vmem:[%s5237_s1 + $0xd0] sm:$0xff] }
 0x124   : > { %v859_v26 = vmax.f32 %v819_v43, 0.0  ;;  %v739_v49 = vadd.f32 %v3759_v12, %v374_v27  ;;  %v733_v41 = vpop.f32.mrb[21].mxu0 }
 0x125   : > { %v854_v30 = vmax.f32 %v814_v1, 0.0  ;;  %v734_v59 = vadd.f32 %v733_v41, %v369_v14  ;;  %3549 = vmatmul.mubr.msk.f32.vlgmr.msra.gmra.mrb[16].mxu1 %vm908_vm14, %v880_v23  ;;  %3986 = vmatprep.subr.bf16.mxu1 %v3985_v34 }
 0x126   : > { %v829_v47 = vadd.f32 %v4730_v37, %v739_v49  ;;  %3553 = vmatmul.mubr.msk.f32.vlgmr.msra.gmra.mrb[24].mxu0 %vm908_vm14, %v880_v23  ;;  %3988 = vmatpush3.bf16.msra.mxu1 %v3985_v34 }
 0x127   : > { %v824_v60 = vadd.f32 %v4721_v0, %v734_v59  ;;  %v3762_v20 = vpop.f32.mrb[22].mxu0  ;;  %991 = vmatprep.mubr.f32.mxu1 %v4252_v16  ;;  %1080 = vmatprep.mubr.f32.mxu0 %v4252_v16  ;;  %v3989_v37 = vpack.c.bf16 %v859_v26, %v854_v30 }
 0x128   : > { %v869_v2 = vmax.f32 %v829_v47, 0.0  ;;  %v749_v32 = vadd.f32 %v3762_v20, %v384_v4  ;;  %v743_v21 = vpop.f32.mrb[23].mxu0 }
 0x129   : > { %v864_v38 = vmax.f32 %v824_v60, 0.0  ;;  %v744_v39 = vadd.f32 %v743_v21, %v379_v29  ;;  %3550 = vmatmul.mubr.msk.f32.gmra.mrb[18].mxu1 %vm908_vm14, %v881_v35  ;;  %3990 = vmatprep.subr.bf16.mxu1 %v3989_v37  ;;  %v906_v60 = vpop.permute.xlu1 %905 }
 0x12a   : > { %v839_v53 = vadd.f32 %v4755_v42, %v749_v32  ;;  %3554 = vmatmul.mubr.msk.f32.gmra.mrb[26].mxu0 %vm908_vm14, %v881_v35  ;;  %3992 = vmatpush3.bf16.msra.mxu1 %v3989_v37  ;;  %v883_v42 = vld [vmem:[%s5237_s1 + $0xd8] sm:$0xff] }
 0x12b   : > { %v834_v63 = vadd.f32 %v4747_v62, %v744_v39  ;;  %997 = vmatprep.mubr.f32.mxu1 %v4252_v16  ;;  %1086 = vmatprep.mubr.f32.mxu0 %v4252_v16  ;;  %v3993_v0 = vpack.c.bf16 %v869_v2, %v864_v38 }
 0x12c   : > { %v879_v40 = vmax.f32 %v839_v53, 0.0 }
 0x12d   : > { %v874_v24 = vmax.f32 %v834_v63, 0.0  ;;  %3551 = vmatmul.mubr.msk.f32.gmra.mrb[20].mxu1 %vm908_vm14, %v882_v25  ;;  %3994 = vmatprep.subr.bf16.mxu1 %v3993_v0 }
 0x12e   : > { %3555 = vmatmul.mubr.msk.f32.gmra.mrb[28].mxu0 %vm908_vm14, %v882_v25  ;;  %3996 = vmatpush3.bf16.msra.mxu1 %v3993_v0 }
 0x12f   : > { %1003 = vmatprep.mubr.f32.mxu1 %v4252_v16  ;;  %1092 = vmatprep.mubr.f32.mxu0 %v4252_v16  ;;  %v3997_v62 = vpack.c.bf16 %v879_v40, %v874_v24 }
 0x131   : > { %3552 = vmatmul.mubr.msk.f32.gmra.mrb[22].mxu1 %vm908_vm14, %v883_v42  ;;  %3998 = vmatprep.subr.bf16.mxu1 %v3997_v62 }
 0x132   : > { %3556 = vmatmul.mubr.msk.f32.gmra.mrb[30].mxu0 %vm908_vm14, %v883_v42  ;;  %4000 = vmatpush3.bf16.msra.mxu1 %v3997_v62 }
 0x133   : > { %3779 = vmatprep.mubr.msk.f32.mxu1 %vm908_vm14, %v880_v23  ;;  %1402 = vmatprep.mubr.f32.mxu0 %v4252_v16 }
 0x135   : > { %3780 = vmatmul.mubr.msk.f32.vlgmr.msra.gmra.mrb[24].mxu1 %vm908_vm14, %v881_v35 }
 0x136   : > { %3782 = vmatprep.mubr.msk.f32.mxu1 %vm908_vm14, %v882_v25 }
 0x139   : > { %3783 = vmatmul.mubr.msk.f32.gmra.mrb[26].mxu1 %vm908_vm14, %v883_v42 }
 0x13a   : > { %1313 = vmatprep.mubr.f32.mxu1 %v4252_v16 }
 0x1f8   : > { %v987_v45 = vpop.f32.mrb[16].mxu1 }
 0x1f9   : > { %v988_v3 = vadd.f32 %v987_v45, %v4818_v44  ;;  %v1076_v46 = vpop.f32.mrb[24].mxu0  ;;  %v989_v10 = vpop.f32.mrb[17].mxu1 }
 0x1fa   : > { %v1077_v11 = vadd.f32 %v1076_v46, %v4818_v44  ;;  %v990_v7 = vadd.f32 %v989_v10, %v4818_v44  ;;  %v1078_v48 = vpop.f32.mrb[25].mxu0 }
 0x1fb   : > { %v1184_v50 = vmax.f32 %v988_v3, 0.0  ;;  %v1079_v22 = vadd.f32 %v1078_v48, %v4818_v44 }
 0x1fc   : > { %v1185_v51 = vmax.f32 %v990_v7, 0.0  ;;  %v993_v31 = vpop.f32.mrb[18].mxu1  ;;  %v1186_v17 = vmax.f32 %v1077_v11, 0.0 }
 0x1fd   : > { %v994_v52 = vadd.f32 %v993_v31, %v896_v19  ;;  %v1082_v54 = vpop.f32.mrb[26].mxu0  ;;  %v995_v36 = vpop.f32.mrb[19].mxu1  ;;  %v1187_v6 = vmax.f32 %v1079_v22, 0.0 }
 0x1fe   : > { %v1831_v56 = vadd.f32 %v1185_v51, %v1184_v50  ;;  %v1083_v57 = vadd.f32 %v1082_v54, %v896_v19  ;;  %v996_v18 = vadd.f32 %v995_v36, %v896_v19  ;;  %v1084_v58 = vpop.f32.mrb[27].mxu0 }
 0x1ff   : > { %v1189_v33 = vmax.f32 %v994_v52, 0.0  ;;  %v1085_v61 = vadd.f32 %v1084_v58, %v896_v19 }
 0x200   : > { %v1835_v9 = vadd.f32 %v1831_v56, %v1186_v17  ;;  %v1191_v13 = vmax.f32 %v1083_v57, 0.0  ;;  %v1190_v55 = vmax.f32 %v996_v18, 0.0  ;;  %v999_v43 = vpop.f32.mrb[20].mxu1 }
 0x201   : > { %v4826_v27 = vpack.c.bf16 %v1189_v33, %v1184_v50  ;;  %v1192_v23 = vmax.f32 %v1085_v61, 0.0  ;;  %v1000_v1 = vadd.f32 %v999_v43, %v4824_v5  ;;  %v1088_v12 = vpop.f32.mrb[28].mxu0  ;;  %v1001_v14 = vpop.f32.mrb[21].mxu1 }
 0x202   : > { %v1839_v34 = vadd.f32 %v1835_v9, %v1187_v6  ;;  %v4829_v26 = vpack.c.bf16 %v1191_v13, %v1186_v17  ;;  %v4831_v49 = vpack.c.bf16 %v1190_v55, %v1185_v51  ;;  %v1832_v41 = vadd.f32 %v1190_v55, %v1189_v33  ;;  %v1090_v30 = vpop.f32.mrb[29].mxu0 }
 0x203   : > { %v4833_v59 = vpack.c.bf16 %v1192_v23, %v1187_v6  ;;  %v1194_v47 = vmax.f32 %v1000_v1, 0.0  ;;  %v1089_v4 = vadd.f32 %v1088_v12, %v4824_v5  ;;  %v1002_v35 = vadd.f32 %v1001_v14, %v4824_v5  ;;  %v1209_v14 = vld [vmem:[%s5237_s1 + $0x108] sm:$0xff] }
 0x204   : > { %v1836_v20 = vadd.f32 %v1832_v41, %v1191_v13  ;;  %v1091_v29 = vadd.f32 %v1090_v30, %v4824_v5  ;;  %v1005_v37 = vpop.f32.mrb[22].mxu1  ;;  %4002 = vmatprep.subr.bf16.mxu1 %v4831_v49 }
 0x205   : > { %v1195_v2 = vmax.f32 %v1002_v35, 0.0  ;;  %v1006_v32 = vadd.f32 %v1005_v37, %v906_v60  ;;  %v1094_v21 = vpop.f32.mrb[30].mxu0  ;;  %4010 = vmatprep.subr.bf16.mxu0 %v4833_v59  ;;  %v1007_v38 = vpop.f32.mrb[23].mxu1  ;;  %4004 = vmatpush1.bf16.msra.mxu1 %v4826_v27  ;;  %v1196_v0 = vmax.f32 %v1089_v4, 0.0  ;;  %v1210_v4 = vld [vmem:[%s5237_s1 + $0x110] sm:$0xff] }
 0x206   : > { %v1840_v39 = vadd.f32 %v1836_v20, %v1192_v23  ;;  %v1095_v53 = vadd.f32 %v1094_v21, %v906_v60  ;;  %v1008_v25 = vadd.f32 %v1007_v38, %v906_v60  ;;  %v1096_v63 = vpop.f32.mrb[31].mxu0  ;;  %4012 = vmatpush1.bf16.msra.mxu0 %v4829_v26  ;;  %v1197_v62 = vmax.f32 %v1091_v29, 0.0  ;;  %v1224_v38 = vpop.permute.xlu1 %1223 }
 0x207   : > { %v1833_v40 = vadd.f32 %v1195_v2, %v1194_v47  ;;  %v1199_v24 = vmax.f32 %v1006_v32, 0.0  ;;  %v1097_v42 = vadd.f32 %v1096_v63, %v906_v60 }
 0x208   : > { %v1201_v45 = vmax.f32 %v1095_v53, 0.0  ;;  %v1200_v3 = vmax.f32 %v1008_v25, 0.0  ;;  %v3781_v46 = vpop.f32.mrb[24].mxu1 }
 0x209   : > { %v1837_v10 = vadd.f32 %v1833_v40, %v1196_v0  ;;  %v4842_v11 = vpack.c.bf16 %v1199_v24, %v1194_v47  ;;  %v1202_v7 = vmax.f32 %v1097_v42, 0.0  ;;  %v1171_v48 = vadd.f32 %v3781_v46, %v896_v19  ;;  %v1165_v50 = vpop.f32.mrb[25].mxu1 }
 0x20a   : > { %v4844_v51 = vpack.c.bf16 %v1201_v45, %v1196_v0  ;;  %v4846_v22 = vpack.c.bf16 %v1200_v3, %v1195_v2  ;;  %v1834_v31 = vadd.f32 %v1200_v3, %v1199_v24  ;;  %v1166_v52 = vadd.f32 %v1165_v50, %v4818_v44  ;;  %v1208_v44 = vld [vmem:[%s5237_s1 + $0x100] sm:$0xff]  ;;  %v4900_v2 = vpop.permute.xlu0 %1218 }
 0x20b   : > { %v1841_v54 = vadd.f32 %v1837_v10, %v1197_v62  ;;  %v4849_v36 = vpack.c.bf16 %v1202_v7, %v1197_v62  ;;  %v1193_v17 = vmax.f32 %v1171_v48, 0.0 }
 0x20c   : > { %v1838_v56 = vadd.f32 %v1834_v31, %v1201_v45  ;;  %v1188_v57 = vmax.f32 %v1166_v52, 0.0  ;;  %v3784_v18 = vpop.f32.mrb[26].mxu1  ;;  %4006 = vmatprep.subr.bf16.mxu1 %v4846_v22 }
 0x20d   : > { %v1844_v58 = vadd.f32 %v1840_v39, %v1193_v17  ;;  %v1181_v33 = vadd.f32 %v3784_v18, %v906_v60  ;;  %4014 = vmatprep.subr.bf16.mxu0 %v4849_v36  ;;  %v1175_v19 = vpop.f32.mrb[27].mxu1  ;;  %4008 = vmatpush1.bf16.msra.mxu1 %v4842_v11  ;;  %v1211_v60 = vld [vmem:[%s5237_s1 + $0x118] sm:$0xff] }
 0x20e   : > { %v1842_v61 = vadd.f32 %v1838_v56, %v1202_v7  ;;  %v4857_v6 = vpack.c.bf16 %v1193_v17, %v1188_v57  ;;  %v1843_v9 = vadd.f32 %v1839_v34, %v1188_v57  ;;  %v1176_v13 = vadd.f32 %v1175_v19, %v4824_v5  ;;  %4016 = vmatpush1.bf16.msra.mxu0 %v4844_v51 }
 0x20f   : > { %v1852_v55 = vmul.f32 0.2, %v1844_v58  ;;  %v1203_v43 = vmax.f32 %v1181_v33, 0.0  ;;  %v1229_v58 = vpop.permute.xlu0 %1228 }
 0x210   : > { %v1851_v23 = vmul.f32 0.2, %v1843_v9  ;;  %v1198_v1 = vmax.f32 %v1176_v13, 0.0  ;;  %3561 = vmatmul.mubr.msk.f32.vlgmr.msra.gmra.mrb[28].mxu1 %vm1236_vm15, %v1208_v44  ;;  %4018 = vmatprep.subr.bf16.mxu1 %v4857_v6  ;;  %v1234_v13 = vpop.permute.xlu1 %1233 }
 0x211   : > { %v1846_v12 = vadd.f32 %v1842_v61, %v1203_v43  ;;  %3565 = vmatmul.mubr.msk.f32.vlgmr.msra.gmra.mrb[32].mxu0 %vm1236_vm15, %v1208_v44  ;;  %4020 = vmatpush3.bf16.msra.mxu1 %v4857_v6 }
 0x212   : > { %v4868_v5 = vpack.c.bf16 %v1203_v43, %v1198_v1  ;;  %v1845_v34 = vadd.f32 %v1841_v54, %v1198_v1  ;;  %1319 = vmatprep.mubr.f32.mxu1 %v4252_v16  ;;  %1408 = vmatprep.mubr.f32.mxu0 %v4252_v16  ;;  %v4872_v41 = vpack.c.bf16 %v1852_v55, %v1851_v23 }
 0x213   : > { %v1854_v30 = vmul.f32 0.2, %v1846_v12 }
 0x214   : > { %v1853_v47 = vmul.f32 0.2, %v1845_v34  ;;  %3562 = vmatmul.mubr.msk.f32.gmra.mrb[30].mxu1 %vm1236_vm15, %v1209_v14  ;;  %4022 = vmatprep.subr.bf16.mxu1 %v4868_v5 }
 0x215   : > { %3566 = vmatmul.mubr.msk.f32.gmra.mrb[34].mxu0 %vm1236_vm15, %v1209_v14  ;;  %4024 = vmatpush3.bf16.msra.mxu1 %v4868_v5 }
 0x216   : > { %1325 = vmatprep.mubr.f32.mxu1 %v4252_v16  ;;  %1414 = vmatprep.mubr.f32.mxu0 %v4252_v16  ;;  %v4883_v35 = vpack.c.bf16 %v1854_v30, %v1853_v47 }
 0x218   : > { %3563 = vmatmul.mubr.msk.f32.gmra.mrb[32].mxu1 %vm1236_vm15, %v1210_v4 }
 0x219   : > { %3567 = vmatmul.mubr.msk.f32.gmra.mrb[36].mxu0 %vm1236_vm15, %v1210_v4  ;;  %1331 = vmatprep.mubr.f32.mxu1 %v4252_v16 }
 0x21a   : > { %1420 = vmatprep.mubr.f32.mxu0 %v4252_v16 }
 0x21c   : > { %3564 = vmatmul.mubr.msk.f32.gmra.mrb[34].mxu1 %vm1236_vm15, %v1211_v60 }
 0x21d   : > { %3568 = vmatmul.mubr.msk.f32.gmra.mrb[38].mxu0 %vm1236_vm15, %v1211_v60  ;;  %3793 = vmatprep.mubr.msk.f32.mxu1 %vm1236_vm15, %v1208_v44 }
 0x21e   : > { %1632 = vmatprep.mubr.f32.mxu0 %v4252_v16 }
 0x220   : > { %3794 = vmatmul.mubr.msk.f32.vlgmr.msra.gmra.mrb[36].mxu1 %vm1236_vm15, %v1209_v14 }
 0x221   : > { %3796 = vmatprep.mubr.msk.f32.mxu1 %vm1236_vm15, %v1210_v4 }
 0x224   : > { %3797 = vmatmul.mubr.msk.f32.gmra.mrb[38].mxu1 %vm1236_vm15, %v1211_v60 }
 0x225   : > { %1721 = vmatprep.mubr.f32.mxu1 %v4252_v16 }
 0x2e3   : > { %v1315_v20 = vpop.f32.mrb[28].mxu1 }
 0x2e4   : > { %v1404_v29 = vpop.f32.mrb[32].mxu0  ;;  %v1317_v37 = vpop.f32.mrb[29].mxu1  ;;  %v1316_v21 = vadd.f32 %v1315_v20, %v4900_v2 }
 0x2e5   : > { %v1406_v32 = vpop.f32.mrb[33].mxu0  ;;  %v1405_v39 = vadd.f32 %v1404_v29, %v4900_v2  ;;  %v1318_v53 = vadd.f32 %v1317_v37, %v4900_v2 }
 0x2e6   : > { %v1407_v63 = vadd.f32 %v1406_v32, %v4900_v2  ;;  %v1512_v3 = vmax.f32 %v1316_v21, 0.0 }
 0x2e7   : > { %v1321_v25 = vpop.f32.mrb[30].mxu1  ;;  %v1514_v7 = vmax.f32 %v1405_v39, 0.0  ;;  %v1513_v48 = vmax.f32 %v1318_v53, 0.0 }
 0x2e8   : > { %v1322_v0 = vadd.f32 %v1321_v25, %v1224_v38  ;;  %v1410_v40 = vpop.f32.mrb[34].mxu0  ;;  %v1323_v24 = vpop.f32.mrb[31].mxu1  ;;  %v1515_v54 = vmax.f32 %v1407_v63, 0.0 }
 0x2e9   : > { %v1411_v42 = vadd.f32 %v1410_v40, %v1224_v38  ;;  %v1324_v62 = vadd.f32 %v1323_v24, %v1224_v38  ;;  %v1412_v45 = vpop.f32.mrb[35].mxu0 }
 0x2ea   : > { %v1517_v46 = vmax.f32 %v1322_v0, 0.0  ;;  %v1413_v10 = vadd.f32 %v1412_v45, %v1224_v38 }
 0x2eb   : > { %v1519_v50 = vmax.f32 %v1411_v42, 0.0  ;;  %v1518_v31 = vmax.f32 %v1324_v62, 0.0  ;;  %v1327_v52 = vpop.f32.mrb[32].mxu1 }
 0x2ec   : > { %v4027_v17 = vpack.c.bf16 %v1517_v46, %v1512_v3  ;;  %v1520_v56 = vmax.f32 %v1413_v10, 0.0  ;;  %v1416_v57 = vpop.f32.mrb[36].mxu0  ;;  %v1329_v18 = vpop.f32.mrb[33].mxu1  ;;  %v1328_v9 = vadd.f32 %v1327_v52, %v1229_v58 }
 0x2ed   : > { %v4035_v33 = vpack.c.bf16 %v1519_v50, %v1514_v7  ;;  %v4025_v19 = vpack.c.bf16 %v1518_v31, %v1513_v48  ;;  %v1418_v44 = vpop.f32.mrb[37].mxu0  ;;  %v1417_v55 = vadd.f32 %v1416_v57, %v1229_v58  ;;  %v1330_v43 = vadd.f32 %v1329_v18, %v1229_v58  ;;  %v1204_v31 = vld [vmem:[%s5237_s1 + $0x140] sm:$0xff]  ;;  %v1206_v57 = vld [vmem:[%s5237_s1 + $0x150] sm:$0xff]  ;;  %v1850_v18 = vld [vmem:[%s5237_s1 + $0x1b8] sm:$0xff] }
 0x2ee   : > { %v4033_v61 = vpack.c.bf16 %v1520_v56, %v1515_v54  ;;  %v1419_v1 = vadd.f32 %v1418_v44, %v1229_v58  ;;  %v1522_v60 = vmax.f32 %v1328_v9, 0.0 }
 0x2ef   : > { %v1333_v23 = vpop.f32.mrb[34].mxu1  ;;  %4026 = vmatprep.subr.bf16.mxu0 %v4025_v19  ;;  %v1524_v37 = vmax.f32 %v1417_v55, 0.0  ;;  %v1523_v32 = vmax.f32 %v1330_v43, 0.0 }
 0x2f0   : > { %v1334_v12 = vadd.f32 %v1333_v23, %v1234_v13  ;;  %v1422_v14 = vpop.f32.mrb[38].mxu0  ;;  %4034 = vmatprep.subr.bf16.mxu1 %v4033_v61  ;;  %v1335_v34 = vpop.f32.mrb[35].mxu1  ;;  %4028 = vmatpush1.bf16.msra.mxu0 %v4027_v17  ;;  %v1525_v25 = vmax.f32 %v1419_v1, 0.0  ;;  %v1205_v17 = vld [vmem:[%s5237_s1 + $0x148] sm:$0xff] }
 0x2f1   : > { %v1423_v30 = vadd.f32 %v1422_v14, %v1234_v13  ;;  %v1336_v47 = vadd.f32 %v1335_v34, %v1234_v13  ;;  %v1424_v4 = vpop.f32.mrb[39].mxu0  ;;  %4036 = vmatpush1.bf16.msra.mxu1 %v4035_v33 }
 0x2f2   : > { %v1527_v20 = vmax.f32 %v1334_v12, 0.0  ;;  %v1425_v29 = vadd.f32 %v1424_v4, %v1234_v13 }
 0x2f3   : > { %v1529_v21 = vmax.f32 %v1423_v30, 0.0  ;;  %v1528_v39 = vmax.f32 %v1336_v47, 0.0  ;;  %v3795_v53 = vpop.f32.mrb[36].mxu1 }
 0x2f4   : > { %v4031_v63 = vpack.c.bf16 %v1527_v20, %v1522_v60  ;;  %v1530_v0 = vmax.f32 %v1425_v29, 0.0  ;;  %v1499_v40 = vadd.f32 %v3795_v53, %v1224_v38  ;;  %v1493_v24 = vpop.f32.mrb[37].mxu1  ;;  %v1862_v29 = vpop.permute.xlu0 %1861 }
 0x2f5   : > { %v4039_v42 = vpack.c.bf16 %v1529_v21, %v1524_v37  ;;  %v4029_v62 = vpack.c.bf16 %v1528_v39, %v1523_v32  ;;  %v1494_v45 = vadd.f32 %v1493_v24, %v4900_v2 }
 0x2f6   : > { %v4037_v3 = vpack.c.bf16 %v1530_v0, %v1525_v25  ;;  %v1521_v46 = vmax.f32 %v1499_v40, 0.0 }
 0x2f7   : > { %v1516_v10 = vmax.f32 %v1494_v45, 0.0  ;;  %v3798_v7 = vpop.f32.mrb[38].mxu1  ;;  %4030 = vmatprep.subr.bf16.mxu0 %v4029_v62 }
 0x2f8   : > { %v1509_v48 = vadd.f32 %v3798_v7, %v1234_v13  ;;  %4038 = vmatprep.subr.bf16.mxu1 %v4037_v3  ;;  %v1503_v50 = vpop.f32.mrb[39].mxu1  ;;  %4032 = vmatpush1.bf16.msra.mxu0 %v4031_v63  ;;  %v1867_v63 = vpop.permute.xlu1 %1866 }
 0x2f9   : > { %v4041_v52 = vpack.c.bf16 %v1521_v46, %v1516_v10  ;;  %v1504_v38 = vadd.f32 %v1503_v50, %v1229_v58  ;;  %4040 = vmatpush1.bf16.msra.mxu1 %v4039_v42  ;;  %v1872_v7 = vpop.permute.xlu0 %1871 }
 0x2fa   : > { %v1531_v54 = vmax.f32 %v1509_v48, 0.0  ;;  %4050 = vmatprep.subr.bf16.mxu1 %v4872_v41 }
 0x2fb   : > { %v1526_v2 = vmax.f32 %v1504_v38, 0.0  ;;  %3573 = vmatmul.mubr.msk.f32.vlgmr.msra.gmra.mrb[40].mxu0 %vm1236_vm15, %v1204_v31  ;;  %4042 = vmatprep.subr.bf16.mxu0 %v4041_v52 }
 0x2fc   : > { %3577 = vmatmul.mubr.msk.f32.vlgmr.msra.gmra.mrb[40].mxu1 %vm1236_vm15, %v1204_v31  ;;  %4044 = vmatpush3.bf16.msra.mxu0 %v4041_v52 }
 0x2fd   : > { %v4045_v56 = vpack.c.bf16 %v1531_v54, %v1526_v2  ;;  %4052 = vmatpush3.bf16.msra.mxu1 %v4872_v41  ;;  %1638 = vmatprep.mubr.f32.mxu0 %v4252_v16  ;;  %v1207_v41 = vld [vmem:[%s5237_s1 + $0x158] sm:$0xff] }
 0x2fe   : > { %4054 = vmatprep.subr.bf16.mxu1 %v4883_v35  ;;  %1727 = vmatprep.mubr.f32.mxu1 %v4252_v16 }
 0x2ff   : > { %3574 = vmatmul.mubr.msk.f32.gmra.mrb[42].mxu0 %vm1236_vm15, %v1205_v17  ;;  %4046 = vmatprep.subr.bf16.mxu0 %v4045_v56 }
 0x300   : > { %3578 = vmatmul.mubr.msk.f32.gmra.mrb[42].mxu1 %vm1236_vm15, %v1205_v17  ;;  %4048 = vmatpush3.bf16.msra.mxu0 %v4045_v56 }
 0x301   : > { %4056 = vmatpush3.bf16.msra.mxu1 %v4883_v35  ;;  %4058 = vmatprep.subr.bf16.mxu0 %v4831_v49  ;;  %v1847_v49 = vld [vmem:[%s5237_s1 + $0x1a0] sm:$0xff]  ;;  %v1849_v35 = vld [vmem:[%s5237_s1 + $0x1b0] sm:$0xff] }
 0x302   : > { %4066 = vmatprep.subr.bf16.mxu1 %v4833_v59  ;;  %1644 = vmatprep.mubr.f32.mxu0 %v4252_v16  ;;  %v1848_v59 = vld [vmem:[%s5237_s1 + $0x1a8] sm:$0xff] }
 0x303   : > { %1733 = vmatprep.mubr.f32.mxu1 %v4252_v16  ;;  %3575 = vmatmul.mubr.msk.f32.gmra.mrb[44].mxu0 %vm1236_vm15, %v1206_v57 }
 0x304   : > { %3579 = vmatmul.mubr.msk.f32.gmra.mrb[44].mxu1 %vm1236_vm15, %v1206_v57  ;;  %1650 = vmatprep.mubr.f32.mxu0 %v4252_v16 }
 0x305   : > { %1739 = vmatprep.mubr.f32.mxu1 %v4252_v16 }
 0x307   : > { %3576 = vmatmul.mubr.msk.f32.gmra.mrb[46].mxu0 %vm1236_vm15, %v1207_v41 }
 0x308   : > { %3580 = vmatmul.mubr.msk.f32.gmra.mrb[46].mxu1 %vm1236_vm15, %v1207_v41  ;;  %3807 = vmatprep.mubr.msk.f32.mxu0 %vm1236_vm15, %v1204_v31 }
 0x309   : > { %3821 = vmatprep.mubr.msk.f32.mxu1 %vm1236_vm15, %v1847_v49 }
 0x30b   : > { %3808 = vmatmul.mubr.msk.f32.vlgmr.msra.gmra.mrb[48].mxu0 %vm1236_vm15, %v1205_v17 }
 0x30c   : > { %3822 = vmatmul.mubr.msk.f32.vlgmr.msra.gmra.mrb[48].mxu1 %vm1236_vm15, %v1848_v59  ;;  %4060 = vmatpush1.bf16.msra.mxu0 %v4826_v27  ;;  %v1976_v27 = vld [vmem:[%s5237_s1 + $0x180] sm:$0xff] }
 0x30d   : > { %4068 = vmatpush1.bf16.msra.mxu1 %v4829_v26  ;;  %4062 = vmatprep.subr.bf16.mxu0 %v4846_v22  ;;  %v1977_v26 = vld [vmem:[%s5237_s1 + $0x188] sm:$0xff] }
 0x30e   : > { %4070 = vmatprep.subr.bf16.mxu1 %v4849_v36  ;;  %3810 = vmatprep.mubr.msk.f32.mxu0 %vm1236_vm15, %v1206_v57 }
 0x30f   : > { %3824 = vmatprep.mubr.msk.f32.mxu1 %vm1236_vm15, %v1849_v35  ;;  %3811 = vmatmul.mubr.msk.f32.gmra.mrb[50].mxu0 %vm1236_vm15, %v1207_v41 }
 0x310   : > { %3825 = vmatmul.mubr.msk.f32.gmra.mrb[50].mxu1 %vm1236_vm15, %v1850_v18  ;;  %4064 = vmatpush1.bf16.msra.mxu0 %v4842_v11  ;;  %v1978_v11 = vld [vmem:[%s5237_s1 + $0x190] sm:$0xff] }
 0x311   : > { %4072 = vmatpush1.bf16.msra.mxu1 %v4844_v51  ;;  %4074 = vmatprep.subr.bf16.mxu0 %v4857_v6  ;;  %v1979_v51 = vld [vmem:[%s5237_s1 + $0x198] sm:$0xff] }
 0x312   : > { %2056 = vmatprep.mubr.f32.mxu0 %v4252_v16  ;;  %2145 = vmatprep.mubr.f32.mxu1 %v4252_v16 }
 0x313   : > { %3589 = vmatmul.mubr.msk.f32.vlgmr.msra.gmra.mrb[52].mxu0 %vm1236_vm15, %v1976_v27 }
 0x314   : > { %3593 = vmatmul.mubr.msk.f32.vlgmr.msra.gmra.mrb[52].mxu1 %vm1236_vm15, %v1976_v27  ;;  %4076 = vmatpush3.bf16.msra.mxu0 %v4857_v6 }
 0x315   : > { %4078 = vmatprep.subr.bf16.mxu0 %v4868_v5  ;;  %2062 = vmatprep.mubr.f32.mxu0 %v4252_v16 }
 0x316   : > { %2151 = vmatprep.mubr.f32.mxu1 %v4252_v16 }
 0x317   : > { %3590 = vmatmul.mubr.msk.f32.gmra.mrb[54].mxu0 %vm1236_vm15, %v1977_v26 }
 0x318   : > { %3594 = vmatmul.mubr.msk.f32.gmra.mrb[54].mxu1 %vm1236_vm15, %v1977_v26  ;;  %4080 = vmatpush3.bf16.msra.mxu0 %v4868_v5 }
 0x319   : > { %2068 = vmatprep.mubr.f32.mxu0 %v4252_v16  ;;  %2157 = vmatprep.mubr.f32.mxu1 %v4252_v16 }
 0x31b   : > { %3591 = vmatmul.mubr.msk.f32.gmra.mrb[56].mxu0 %vm1236_vm15, %v1978_v11 }
 0x31c   : > { %3595 = vmatmul.mubr.msk.f32.gmra.mrb[56].mxu1 %vm1236_vm15, %v1978_v11  ;;  %2074 = vmatprep.mubr.f32.mxu0 %v4252_v16 }
 0x31d   : > { %2163 = vmatprep.mubr.f32.mxu1 %v4252_v16 }
 0x31f   : > { %3592 = vmatmul.mubr.msk.f32.gmra.mrb[58].mxu0 %vm1236_vm15, %v1979_v51 }
 0x320   : > { %3596 = vmatmul.mubr.msk.f32.gmra.mrb[58].mxu1 %vm1236_vm15, %v1979_v51  ;;  %3835 = vmatprep.mubr.msk.f32.mxu0 %vm1236_vm15, %v1976_v27 }
 0x321   : > { %2379 = vmatprep.mubr.f32.mxu1 %v4252_v16 }
 0x323   : > { %3836 = vmatmul.mubr.msk.f32.vlgmr.msra.gmra.mrb[60].mxu0 %vm1236_vm15, %v1977_v26 }
 0x324   : > { %3838 = vmatprep.mubr.msk.f32.mxu0 %vm1236_vm15, %v1978_v11 }
 0x327   : > { %3839 = vmatmul.mubr.msk.f32.gmra.mrb[62].mxu0 %vm1236_vm15, %v1979_v51  ;;  %v1877_v51 = vpop.permute.xlu1 %1876 }
 0x328   : > { %2468 = vmatprep.mubr.f32.mxu0 %v4252_v16 }
 0x3ce   : > { %v5003_v22 = vpop.f32.mrb[40].mxu0 }
 0x3cf   : > { %v5005_v36 = vpop.f32.mrb[40].mxu1  ;;  %v5007_v6 = vpop.f32.mrb[41].mxu0 }
 0x3d0   : > { %v5009_v5 = vpop.f32.mrb[41].mxu1 }
 0x3d2   : > { %v5011_v58 = vpop.f32.mrb[42].mxu0 }
 0x3d3   : > { %v5013_v33 = vpop.f32.mrb[42].mxu1  ;;  %v5015_v19 = vpop.f32.mrb[43].mxu0 }
 0x3d4   : > { %v5017_v44 = vpop.f32.mrb[43].mxu1 }
 0x3d6   : > { %v5019_v61 = vpop.f32.mrb[44].mxu0 }
 0x3d7   : > { %v5021_v9 = vpop.f32.mrb[44].mxu1  ;;  %v5023_v13 = vpop.f32.mrb[45].mxu0 }
 0x3d8   : > { %v5025_v55 = vpop.f32.mrb[45].mxu1 }
 0x3da   : > { %v5027_v43 = vpop.f32.mrb[46].mxu0 }
 0x3db   : > { %v5029_v23 = vpop.f32.mrb[46].mxu1  ;;  %v5031_v1 = vpop.f32.mrb[47].mxu0 }
 0x3dc   : > { %v5033_v12 = vpop.f32.mrb[47].mxu1 }
 0x3de   : > { %v5035_v14 = vpop.f32.mrb[48].mxu0 }
 0x3df   : > { %v3823_v34 = vpop.f32.mrb[48].mxu1  ;;  %v5037_v30 = vpop.f32.mrb[49].mxu0 }
 0x3e0   : > { %v1957_v47 = vpop.f32.mrb[49].mxu1  ;;  %v1963_v42 = vadd.f32 %v3823_v34, %v1867_v63 }
 0x3e1   : > { %v5043_v32 = vadd.f32 %v1957_v47, %v1862_v29 }
 0x3e2   : > { %v5039_v4 = vpop.f32.mrb[50].mxu0 }
 0x3e3   : > { %v3826_v60 = vpop.f32.mrb[50].mxu1  ;;  %v5041_v20 = vpop.f32.mrb[51].mxu0 }
 0x3e4   : > { %v1967_v37 = vpop.f32.mrb[51].mxu1 }
 0x3e5   : > { %v1968_v52 = vadd.f32 %v1967_v37, %v1872_v7 }
 0x3e6   : > { %v2058_v21 = vpop.f32.mrb[52].mxu0 }
 0x3e7   : > { %v2059_v39 = vadd.f32 %v2058_v21, %v5043_v32  ;;  %v2147_v53 = vpop.f32.mrb[52].mxu1  ;;  %v2060_v25 = vpop.f32.mrb[53].mxu0 }
 0x3e8   : > { %v2148_v0 = vadd.f32 %v2147_v53, %v5043_v32  ;;  %v2061_v40 = vadd.f32 %v2060_v25, %v5043_v32  ;;  %v2149_v24 = vpop.f32.mrb[53].mxu1 }
 0x3e9   : > { %v2150_v62 = vadd.f32 %v2149_v24, %v5043_v32  ;;  %v2255_v38 = vmax.f32 %v2059_v39, 0.0  ;;  %v1973_v39 = vadd.f32 %v3826_v60, %v1877_v51 }
 0x3ea   : > { %v2064_v45 = vpop.f32.mrb[54].mxu0  ;;  %v2257_v17 = vmax.f32 %v2148_v0, 0.0  ;;  %v2256_v56 = vmax.f32 %v2061_v40, 0.0 }
 0x3eb   : > { %v2065_v3 = vadd.f32 %v2064_v45, %v1963_v42  ;;  %v2153_v46 = vpop.f32.mrb[54].mxu1  ;;  %v2066_v10 = vpop.f32.mrb[55].mxu0  ;;  %v2258_v59 = vmax.f32 %v2150_v62, 0.0 }
 0x3ec   : > { %v2154_v48 = vadd.f32 %v2153_v46, %v1963_v42  ;;  %v2067_v50 = vadd.f32 %v2066_v10, %v1963_v42  ;;  %v2155_v31 = vpop.f32.mrb[55].mxu1 }
 0x3ed   : > { %v2260_v54 = vmax.f32 %v2065_v3, 0.0  ;;  %v2156_v2 = vadd.f32 %v2155_v31, %v1963_v42 }
 0x3ee   : > { %v2262_v57 = vmax.f32 %v2154_v48, 0.0  ;;  %v2261_v41 = vmax.f32 %v2067_v50, 0.0  ;;  %v2070_v49 = vpop.f32.mrb[56].mxu0 }
 0x3ef   : > { %v4083_v35 = vpack.c.bf16 %v2260_v54, %v2255_v38  ;;  %v2263_v18 = vmax.f32 %v2156_v2, 0.0  ;;  %v2071_v27 = vadd.f32 %v2070_v49, %v1968_v52  ;;  %v2159_v26 = vpop.f32.mrb[56].mxu1  ;;  %v2072_v11 = vpop.f32.mrb[57].mxu0 }
 0x3f0   : > { %v4091_v34 = vpack.c.bf16 %v2262_v57, %v2257_v17  ;;  %v4081_v47 = vpack.c.bf16 %v2261_v41, %v2256_v56  ;;  %v2160_v29 = vadd.f32 %v2159_v26, %v1968_v52  ;;  %v2073_v21 = vadd.f32 %v2072_v11, %v1968_v52  ;;  %v2161_v37 = vpop.f32.mrb[57].mxu1 }
 0x3f1   : > { %v4089_v53 = vpack.c.bf16 %v2263_v18, %v2258_v59  ;;  %v2162_v25 = vadd.f32 %v2161_v37, %v1968_v52  ;;  %v2265_v46 = vmax.f32 %v2071_v27, 0.0 }
 0x3f2   : > { %v2076_v63 = vpop.f32.mrb[58].mxu0  ;;  %4082 = vmatprep.subr.bf16.mxu1 %v4081_v47  ;;  %v2267_v48 = vmax.f32 %v2160_v29, 0.0  ;;  %v2266_v50 = vmax.f32 %v2073_v21, 0.0 }
 0x3f3   : > { %v2077_v0 = vadd.f32 %v2076_v63, %v1973_v39  ;;  %v2165_v40 = vpop.f32.mrb[58].mxu1  ;;  %4090 = vmatprep.subr.bf16.mxu0 %v4089_v53  ;;  %v2078_v24 = vpop.f32.mrb[59].mxu0  ;;  %4084 = vmatpush1.bf16.msra.mxu1 %v4083_v35  ;;  %v2268_v54 = vmax.f32 %v2162_v25, 0.0 }
 0x3f4   : > { %v2166_v62 = vadd.f32 %v2165_v40, %v1973_v39  ;;  %v2079_v45 = vadd.f32 %v2078_v24, %v1973_v39  ;;  %v2167_v3 = vpop.f32.mrb[59].mxu1  ;;  %4092 = vmatpush1.bf16.msra.mxu0 %v4091_v34  ;;  %v2275_v34 = vld [vmem:[%s5237_s1 + $0x1e0] sm:$0xff] }
 0x3f5   : > { %v2270_v10 = vmax.f32 %v2077_v0, 0.0  ;;  %v2168_v7 = vadd.f32 %v2167_v3, %v1973_v39  ;;  %v5082_v0 = vpop.permute.xlu0 %2285 }
 0x3f6   : > { %v2272_v31 = vmax.f32 %v2166_v62, 0.0  ;;  %v2271_v60 = vmax.f32 %v2079_v45, 0.0  ;;  %v3837_v38 = vpop.f32.mrb[60].mxu0  ;;  %v2291_v62 = vpop.permute.xlu1 %2290 }
 0x3f7   : > { %v4087_v2 = vpack.c.bf16 %v2270_v10, %v2265_v46  ;;  %v2273_v17 = vmax.f32 %v2168_v7, 0.0  ;;  %v2242_v56 = vadd.f32 %v3837_v38, %v1963_v42  ;;  %v2236_v57 = vpop.f32.mrb[61].mxu0 }
 0x3f8   : > { %v4095_v41 = vpack.c.bf16 %v2272_v31, %v2267_v48  ;;  %v4085_v49 = vpack.c.bf16 %v2271_v60, %v2266_v50  ;;  %v2237_v59 = vadd.f32 %v2236_v57, %v5043_v32  ;;  %v2276_v32 = vld [vmem:[%s5237_s1 + $0x1e8] sm:$0xff] }
 0x3f9   : > { %v4093_v35 = vpack.c.bf16 %v2273_v17, %v2268_v54  ;;  %v2264_v18 = vmax.f32 %v2242_v56, 0.0 }
 0x3fa   : > { %v2259_v26 = vmax.f32 %v2237_v59, 0.0  ;;  %v3840_v27 = vpop.f32.mrb[62].mxu0  ;;  %4086 = vmatprep.subr.bf16.mxu1 %v4085_v49 }
 0x3fb   : > { %v2252_v11 = vadd.f32 %v3840_v27, %v1973_v39  ;;  %4094 = vmatprep.subr.bf16.mxu0 %v4093_v35  ;;  %v2246_v51 = vpop.f32.mrb[63].mxu0  ;;  %4088 = vmatpush1.bf16.msra.mxu1 %v4087_v2  ;;  %v2278_v39 = vld [vmem:[%s5237_s1 + $0x1f8] sm:$0xff] }
 0x3fc   : > { %v4097_v47 = vpack.c.bf16 %v2264_v18, %v2259_v26  ;;  %v2247_v42 = vadd.f32 %v2246_v51, %v1968_v52  ;;  %4096 = vmatpush1.bf16.msra.mxu0 %v4095_v41  ;;  %v2277_v52 = vld [vmem:[%s5237_s1 + $0x1f0] sm:$0xff]  ;;  %v2296_v51 = vpop.permute.xlu0 %2295 }
 0x3fd   : > { %v2274_v29 = vmax.f32 %v2252_v11, 0.0 }
 0x3fe   : > { %v2269_v21 = vmax.f32 %v2247_v42, 0.0  ;;  %3601 = vmatmul.mubr.msk.f32.vlgmr.msra.gmra.mrb[60].mxu1 %vm1236_vm15, %v2275_v34  ;;  %4098 = vmatprep.subr.bf16.mxu1 %v4097_v47 }
 0x3ff   : > { %3605 = vmatmul.mubr.msk.f32.vlgmr.msra.gmra.mrb[64].mxu0 %vm1236_vm15, %v2275_v34  ;;  %4100 = vmatpush3.bf16.msra.mxu1 %v4097_v47 }
 0x400   : > { %v4101_v37 = vpack.c.bf16 %v2274_v29, %v2269_v21  ;;  %2385 = vmatprep.mubr.f32.mxu1 %v4252_v16  ;;  %2474 = vmatprep.mubr.f32.mxu0 %v4252_v16 }
 0x402   : > { %3602 = vmatmul.mubr.msk.f32.gmra.mrb[62].mxu1 %vm1236_vm15, %v2276_v32  ;;  %4102 = vmatprep.subr.bf16.mxu1 %v4101_v37 }
 0x403   : > { %3606 = vmatmul.mubr.msk.f32.gmra.mrb[66].mxu0 %vm1236_vm15, %v2276_v32  ;;  %4104 = vmatpush3.bf16.msra.mxu1 %v4101_v37 }
 0x404   : > { %2391 = vmatprep.mubr.f32.mxu1 %v4252_v16  ;;  %2480 = vmatprep.mubr.f32.mxu0 %v4252_v16 }
 0x406   : > { %3603 = vmatmul.mubr.msk.f32.gmra.mrb[64].mxu1 %vm1236_vm15, %v2277_v52 }
 0x407   : > { %3607 = vmatmul.mubr.msk.f32.gmra.mrb[68].mxu0 %vm1236_vm15, %v2277_v52  ;;  %2397 = vmatprep.mubr.f32.mxu1 %v4252_v16 }
 0x408   : > { %2486 = vmatprep.mubr.f32.mxu0 %v4252_v16 }
 0x40a   : > { %3604 = vmatmul.mubr.msk.f32.gmra.mrb[66].mxu1 %vm1236_vm15, %v2278_v39 }
 0x40b   : > { %3608 = vmatmul.mubr.msk.f32.gmra.mrb[70].mxu0 %vm1236_vm15, %v2278_v39  ;;  %3849 = vmatprep.mubr.msk.f32.mxu1 %vm1236_vm15, %v2275_v34 }
 0x40c   : > { %2672 = vmatprep.mubr.f32.mxu0 %v4252_v16 }
 0x40e   : > { %3850 = vmatmul.mubr.msk.f32.vlgmr.msra.gmra.mrb[68].mxu1 %vm1236_vm15, %v2276_v32  ;;  %v2301_v32 = vpop.permute.xlu1 %2300 }
 0x40f   : > { %3852 = vmatprep.mubr.msk.f32.mxu1 %vm1236_vm15, %v2277_v52 }
 0x412   : > { %3853 = vmatmul.mubr.msk.f32.gmra.mrb[70].mxu1 %vm1236_vm15, %v2278_v39 }
 0x413   : > { %2743 = vmatprep.mubr.f32.mxu1 %v4252_v16 }
 0x4d1   : > { %v2381_v53 = vpop.f32.mrb[60].mxu1 }
 0x4d2   : > { %v2470_v25 = vpop.f32.mrb[64].mxu0  ;;  %v2383_v63 = vpop.f32.mrb[61].mxu1  ;;  %v2382_v24 = vadd.f32 %v2381_v53, %v5082_v0 }
 0x4d3   : > { %v2472_v40 = vpop.f32.mrb[65].mxu0  ;;  %v2471_v45 = vadd.f32 %v2470_v25, %v5082_v0  ;;  %v2384_v3 = vadd.f32 %v2383_v63, %v5082_v0 }
 0x4d4   : > { %v2473_v10 = vadd.f32 %v2472_v40, %v5082_v0  ;;  %v2578_v54 = vmax.f32 %v2382_v24, 0.0 }
 0x4d5   : > { %v2387_v46 = vpop.f32.mrb[62].mxu1  ;;  %v2580_v56 = vmax.f32 %v2471_v45, 0.0  ;;  %v2579_v57 = vmax.f32 %v2384_v3, 0.0 }
 0x4d6   : > { %v2388_v7 = vadd.f32 %v2387_v46, %v2291_v62  ;;  %v2476_v48 = vpop.f32.mrb[66].mxu0  ;;  %v2389_v50 = vpop.f32.mrb[63].mxu1  ;;  %v2581_v35 = vmax.f32 %v2473_v10, 0.0 }
 0x4d7   : > { %v2477_v31 = vadd.f32 %v2476_v48, %v2291_v62  ;;  %v2390_v60 = vadd.f32 %v2389_v50, %v2291_v62  ;;  %v2478_v38 = vpop.f32.mrb[67].mxu0 }
 0x4d8   : > { %v2583_v2 = vmax.f32 %v2388_v7, 0.0  ;;  %v2479_v17 = vadd.f32 %v2478_v38, %v2291_v62 }
 0x4d9   : > { %v2585_v41 = vmax.f32 %v2477_v31, 0.0  ;;  %v2584_v49 = vmax.f32 %v2390_v60, 0.0  ;;  %v2393_v59 = vpop.f32.mrb[64].mxu1 }
 0x4da   : > { %v4107_v18 = vpack.c.bf16 %v2583_v2, %v2578_v54  ;;  %v2586_v26 = vmax.f32 %v2479_v17, 0.0  ;;  %v2482_v27 = vpop.f32.mrb[68].mxu0  ;;  %v2395_v11 = vpop.f32.mrb[65].mxu1  ;;  %v2394_v21 = vadd.f32 %v2393_v59, %v2296_v51 }
 0x4db   : > { %v4115_v34 = vpack.c.bf16 %v2585_v41, %v2580_v56  ;;  %v4105_v47 = vpack.c.bf16 %v2584_v49, %v2579_v57  ;;  %v2484_v42 = vpop.f32.mrb[69].mxu0  ;;  %v2483_v37 = vadd.f32 %v2482_v27, %v2296_v51  ;;  %v2396_v52 = vadd.f32 %v2395_v11, %v2296_v51 }
 0x4dc   : > { %v4113_v29 = vpack.c.bf16 %v2586_v26, %v2581_v35  ;;  %v2485_v53 = vadd.f32 %v2484_v42, %v2296_v51  ;;  %v2588_v46 = vmax.f32 %v2394_v21, 0.0 }
 0x4dd   : > { %v2399_v39 = vpop.f32.mrb[66].mxu1  ;;  %4106 = vmatprep.subr.bf16.mxu0 %v4105_v47  ;;  %v2590_v48 = vmax.f32 %v2483_v37, 0.0  ;;  %v2589_v50 = vmax.f32 %v2396_v52, 0.0  ;;  %v2598_v47 = vld [vmem:[%s5237_s1 + $0x220] sm:$0x1]  ;;  %v2603_v37 = vpop.permute.xlu0 %2602 }
 0x4de   : > { %v2400_v25 = vadd.f32 %v2399_v39, %v2301_v32  ;;  %v2488_v63 = vpop.f32.mrb[70].mxu0  ;;  %4114 = vmatprep.subr.bf16.mxu1 %v4113_v29  ;;  %v2401_v40 = vpop.f32.mrb[67].mxu1  ;;  %4108 = vmatpush1.bf16.msra.mxu0 %v4107_v18  ;;  %v2591_v54 = vmax.f32 %v2485_v53, 0.0  ;;  %v4253_v29 = vmov 0.0|0.0  }
 0x4df   : > { %v2489_v24 = vadd.f32 %v2488_v63, %v2301_v32  ;;  %v2402_v45 = vadd.f32 %v2401_v40, %v2301_v32  ;;  %v2490_v3 = vpop.f32.mrb[71].mxu0  ;;  %4116 = vmatpush1.bf16.msra.mxu1 %v4115_v34 }
 0x4e0   : > { %v2593_v10 = vmax.f32 %v2400_v25, 0.0  ;;  %v2491_v7 = vadd.f32 %v2490_v3, %v2301_v32 }
 0x4e1   : > { %v2595_v31 = vmax.f32 %v2489_v24, 0.0  ;;  %v2594_v60 = vmax.f32 %v2402_v45, 0.0  ;;  %v3851_v38 = vpop.f32.mrb[68].mxu1 }
 0x4e2   : > { %v4111_v2 = vpack.c.bf16 %v2593_v10, %v2588_v46  ;;  %v2596_v17 = vmax.f32 %v2491_v7, 0.0  ;;  %v2565_v56 = vadd.f32 %v3851_v38, %v2291_v62  ;;  %v2559_v57 = vpop.f32.mrb[69].mxu1 }
 0x4e3   : > { %v4119_v41 = vpack.c.bf16 %v2595_v31, %v2590_v48  ;;  %v4109_v49 = vpack.c.bf16 %v2594_v60, %v2589_v50  ;;  %v2560_v59 = vadd.f32 %v2559_v57, %v5082_v0 }
 0x4e4   : > { %v4117_v35 = vpack.c.bf16 %v2596_v17, %v2591_v54  ;;  %v2587_v18 = vmax.f32 %v2565_v56, 0.0 }
 0x4e5   : > { %v2582_v26 = vmax.f32 %v2560_v59, 0.0  ;;  %v3854_v27 = vpop.f32.mrb[70].mxu1  ;;  %4110 = vmatprep.subr.bf16.mxu0 %v4109_v49 }
 0x4e6   : > { %v2575_v11 = vadd.f32 %v3854_v27, %v2301_v32  ;;  %4118 = vmatprep.subr.bf16.mxu1 %v4117_v35  ;;  %v2569_v34 = vpop.f32.mrb[71].mxu1  ;;  %4112 = vmatpush1.bf16.msra.mxu0 %v4111_v2 }
 0x4e7   : > { %v4122_v42 = vpack.c.bf16 %v2587_v18, %v2582_v26  ;;  %v2570_v62 = vadd.f32 %v2569_v34, %v2296_v51  ;;  %4120 = vmatpush1.bf16.msra.mxu1 %v4119_v41  ;;  %4121 = vmatprep.subr.bf16.mxu0 %v4253_v29  ;;  %v2921_v51 = vld [vmem:[%s5237_s1 + $0x270] sm:$0xff]  ;;  %v1539_v34 = vpop.permute.xlu1 %1538 }
 0x4e8   : > { %v2597_v0 = vmax.f32 %v2575_v11, 0.0 }
 0x4e9   : > { %v2592_v21 = vmax.f32 %v2570_v62, 0.0  ;;  %3613 = vmatmul.mubr.msk.f32.vlgmr.msra.gmra.mrb[72].mxu0 %vm1236_vm15, %v2598_v47  ;;  %v1724_v62 = vadd.f32 %v5005_v36, %v1539_v34 }
 0x4ea   : > { %3614 = vmatmul.mubr.msk.f32.vlgmr.msra.gmra.mrb[72].mxu1 %vm1236_vm15, %v2598_v47  ;;  %4123 = vmatpush3.bf16.msra.mxu0 %v4122_v42  ;;  %v1635_v42 = vadd.f32 %v5003_v22, %v1539_v34 }
 0x4eb   : > { %v4125_v32 = vpack.c.bf16 %v2597_v0, %v2592_v21  ;;  %4124 = vmatprep.subr.bf16.mxu0 %v4253_v29  ;;  %3863 = vmatprep.mubr.msk.f32.mxu0 %vm4254_vm0, %v4252_v16  ;;  %v1637_v0 = vadd.f32 %v5007_v6, %v1539_v34  ;;  %v1549_v21 = vpop.permute.xlu1 %1548 }
 0x4ec   : > { %3874 = vmatprep.mubr.msk.f32.mxu1 %vm1236_vm15, %v2921_v51  ;;  %v1736_v22 = vadd.f32 %v5021_v9, %v1549_v21  ;;  %v1649_v36 = vadd.f32 %v5023_v13, %v1549_v21  ;;  %v1738_v6 = vadd.f32 %v5025_v55, %v1549_v21  ;;  %v1823_v55 = vadd.f32 %v5041_v20, %v1549_v21 }
 0x4ee   : > { %4126 = vmatpush3.bf16.msra.mxu0 %v4125_v32  ;;  %v1726_v32 = vadd.f32 %v5009_v5, %v1539_v34 }
 0x4f1   : > { %3864 = vmatmul.mubr.msk.f32.vlgmr.msra.gmra.mrb[74].mxu0 %vm1236_vm15, %v2598_v47  ;;  %v1544_v47 = vpop.permute.xlu0 %1543 }
 0x4f2   : > { %v1641_v51 = vadd.f32 %v5011_v58, %v1544_v47 }
 0x5bc   : > { %v2674_v52 = vpop.f32.mrb[72].mxu0 }
 0x5bd   : > { %v2675_v39 = vadd.f32 %v2674_v52, %v2603_v37  ;;  %v2745_v53 = vpop.f32.mrb[72].mxu1  ;;  %v2676_v25 = vpop.f32.mrb[73].mxu0  ;;  %v1643_v52 = vadd.f32 %v5015_v19, %v1544_v47 }
 0x5be   : > { %v2677_v63 = vadd.f32 %v2676_v25, %v2603_v37  ;;  %v2747_v40 = vpop.f32.mrb[73].mxu1  ;;  %v2746_v24 = vadd.f32 %v2745_v53, %v2603_v37  ;;  %v1732_v53 = vadd.f32 %v5017_v44, %v1544_v47  ;;  %v1647_v25 = vadd.f32 %v5019_v61, %v1549_v21 }
 0x5bf   : > { %v2748_v3 = vadd.f32 %v2747_v40, %v2603_v37  ;;  %v1818_v44 = vadd.f32 %v5035_v14, %v1544_v47  ;;  %v1813_v61 = vadd.f32 %v5037_v30, %v1539_v34 }
 0x5c0   : > { %v2820_v45 = vmin.f32 %v2675_v39, %v2677_v63 }
 0x5c2   : > { %v2821_v46 = vmin.f32 %v2820_v45, %v2746_v24 }
 0x5c4   : > { %v2822_v10 = vmin.f32 %v2821_v46, %v2748_v3  ;;  %v2816_v7 = vpop.f32.mrb[74].mxu0 }
 0x5c5   : > { %v2817_v48 = vadd.f32 %v2816_v7, %v2603_v37  ;;  %v3865_v50 = vpop.f32.mrb[75].mxu0  ;;  %v1730_v37 = vadd.f32 %v5013_v33, %v1544_v47 }
 0x5c7   : > { %v2823_v31 = vmin.f32 %v2822_v10, %v2817_v48 }
 0x5c9   : > { %v2824_v60 = vsub.f32 %v2675_v39, %v2823_v31  ;;  %v2828_v38 = vsub.f32 %v2677_v63, %v2823_v31  ;;  %v2832_v54 = vsub.f32 %v2746_v24, %v2823_v31  ;;  %v2836_v2 = vsub.f32 %v2748_v3, %v2823_v31  ;;  %v1554_v39 = vpop.permute.xlu0 %1553 }
 0x5ca   : > { %v2840_v17 = vsub.f32 %v2817_v48, %v2823_v31  ;;  %v1653_v5 = vadd.f32 %v5027_v43, %v1554_v39  ;;  %v1742_v58 = vadd.f32 %v5029_v23, %v1554_v39  ;;  %v1655_v33 = vadd.f32 %v5031_v1, %v1554_v39 }
 0x5cb   : > { %v2825_v56 = vmin.f32 %v2824_v60, 50.0  ;;  %v2829_v57 = vmin.f32 %v2828_v38, 50.0  ;;  %v2833_v41 = vmin.f32 %v2832_v54, 50.0  ;;  %v2837_v49 = vmin.f32 %v2836_v2, 50.0 }
 0x5cc   : > { %v2841_v59 = vmin.f32 %v2840_v17, 50.0  ;;  %v1744_v19 = vadd.f32 %v5033_v12, %v1554_v39  ;;  %v1828_v13 = vadd.f32 %v5039_v4, %v1554_v39 }
 0x5cd   : > { %v2826_v35 = vmul.f32 1.442695, %v2825_v56  ;;  %v2830_v18 = vmul.f32 1.442695, %v2829_v57  ;;  %v2834_v26 = vmul.f32 1.442695, %v2833_v41 }
 0x5ce   : > { %v2838_v27 = vmul.f32 1.442695, %v2837_v49  ;;  %v2842_v11 = vmul.f32 1.442695, %v2841_v59 }
 0x5cf   : > { %4214 = vpow2.f32 %v2826_v35 }
 0x5d0   : > { %4216 = vpow2.f32 %v2830_v18 }
 0x5d1   : > { %4218 = vpow2.f32 %v2834_v26 }
 0x5d2   : > { %4220 = vpow2.f32 %v2838_v27 }
 0x5d3   : > { %4222 = vpow2.f32 %v2842_v11 }
 0x5d9   : > { %v4215_v63 = vpop.eup %4214 }
 0x5da   : > { %v4217_v40 = vpop.eup %4216  ;;  %v2852_v9 = vrot.slane %v4215_v63, %v4588_v8 }
 0x5db   : > { %v4219_v24 = vpop.eup %4218  ;;  %v2844_v45 = vadd.f32 %v4217_v40, %v4215_v63  ;;  %v2860_v43 = vrot.slane %v4217_v40, %v4588_v8 }
 0x5dc   : > { %v4221_v23 = vpop.eup %4220  ;;  %v2853_v3 = vmul.f32 %v2852_v9, %v1635_v42  ;;  %v2854_v1 = vmul.f32 %v2852_v9, %v1641_v51  ;;  %v2872_v46 = vrot.slane %v4219_v24, %v4588_v8  ;;  %v2855_v12 = vmul.f32 %v2852_v9, %v1647_v25 }
 0x5dd   : > { %v4223_v10 = vpop.eup %4222  ;;  %v2845_v14 = vadd.f32 %v4219_v24, %v2844_v45  ;;  %v2861_v7 = vmul.f32 %v2860_v43, %v1637_v0  ;;  %v2862_v30 = vmul.f32 %v2860_v43, %v1643_v52  ;;  %v2884_v48 = vrot.slane %v4221_v23, %v4588_v8  ;;  %v2925_v24 = vld [vmem:[%s5237_s1 + $0x290] sm:$0xff]  ;;  %v2914_v45 = vld [vmem:[%s5237_s1 + $0x238] sm:$0xff] }
 0x5de   : > { %v2896_v50 = vrot.slane %v4223_v10, %v4588_v8  ;;  %v2873_v4 = vmul.f32 %v2872_v46, %v1724_v62  ;;  %v2874_v31 = vmul.f32 %v2872_v46, %v1730_v37  ;;  %v2856_v20 = vmul.f32 %v2852_v9, %v1653_v5  ;;  %v2923_v9 = vld [vmem:[%s5237_s1 + $0x280] sm:$0xff] }
 0x5df   : > { %v2846_v60 = vadd.f32 %v4221_v23, %v2845_v14  ;;  %v2865_v38 = vadd.f32 %v2861_v7, %v2853_v3  ;;  %v2866_v54 = vadd.f32 %v2862_v30, %v2854_v1  ;;  %v2885_v2 = vmul.f32 %v2884_v48, %v1726_v32  ;;  %v2916_v23 = vld [vmem:[%s5237_s1 + $0x248] sm:$0xff]  ;;  %v2917_v3 = vld [vmem:[%s5237_s1 + $0x250] sm:$0xff]  ;;  %v2918_v1 = vld [vmem:[%s5237_s1 + $0x258] sm:$0xff]  ;;  %v3203_v14 = vpop.permute.xlu0 %3202  ;;  %v3198_v7 = vpop.permute.xlu1 %3197 }
 0x5e0   : > { %v2886_v17 = vmul.f32 %v2884_v48, %v1732_v53  ;;  %v2897_v56 = vmul.f32 %v2896_v50, %v1813_v61  ;;  %v2898_v57 = vmul.f32 %v2896_v50, %v1818_v44  ;;  %v2863_v41 = vmul.f32 %v2860_v43, %v1649_v36 }
 0x5e1   : > { %v2847_v49 = vadd.f32 %v4223_v10, %v2846_v60  ;;  %v2877_v59 = vadd.f32 %v2873_v4, %v2865_v38  ;;  %v2878_v35 = vadd.f32 %v2874_v31, %v2866_v54  ;;  %v2864_v18 = vmul.f32 %v2860_v43, %v1655_v33  ;;  %v2915_v43 = vld [vmem:[%s5237_s1 + $0x240] sm:$0xff]  ;;  %v3251_v10 = vld [vmem:[%s5237_s1 + $0x2f0] sm:$0xff] }
 0x5e2   : > { %v2867_v26 = vadd.f32 %v2863_v41, %v2855_v12  ;;  %v2875_v27 = vmul.f32 %v2872_v46, %v1736_v22  ;;  %v2876_v11 = vmul.f32 %v2872_v46, %v1742_v58  ;;  %v2887_v34 = vmul.f32 %v2884_v48, %v1738_v6  ;;  %v2919_v46 = vld [vmem:[%s5237_s1 + $0x260] sm:$0xff]  ;;  %v2920_v12 = vld [vmem:[%s5237_s1 + $0x268] sm:$0xff]  ;;  %3918 = vmatprep.mubr.msk.f32.mxu0 %vm908_vm14, %v3251_v10 }
 0x5e3   : > { %4224 = vrcp.f32 %v2847_v49  ;;  %v2889_v47 = vadd.f32 %v2885_v2, %v2877_v59  ;;  %v2890_v42 = vadd.f32 %v2886_v17, %v2878_v35  ;;  %v2868_v62 = vadd.f32 %v2864_v18, %v2856_v20  ;;  %v3213_v30 = vpop.permute.xlu0 %3212 }
 0x5e4   : > { %v2879_v0 = vadd.f32 %v2875_v27, %v2867_v26  ;;  %v2888_v21 = vmul.f32 %v2884_v48, %v1744_v19  ;;  %v2899_v51 = vmul.f32 %v2896_v50, %v1823_v55  ;;  %v2900_v32 = vmul.f32 %v2896_v50, %v1828_v13  ;;  %v2922_v19 = vld [vmem:[%s5237_s1 + $0x278] sm:$0xff]  ;;  %v2927_v55 = vld [vmem:[%s5237_s1 + $0x2a0] sm:$0xff]  ;;  %v3208_v50 = vpop.permute.xlu1 %3207 }
 0x5e5   : > { %v2901_v37 = vadd.f32 %v2897_v56, %v2889_v47  ;;  %v2902_v52 = vadd.f32 %v2898_v57, %v2890_v42  ;;  %v2880_v39 = vadd.f32 %v2876_v11, %v2868_v62  ;;  %v2926_v13 = vld [vmem:[%s5237_s1 + $0x298] sm:$0xff] }
 0x5e6   : > { %v2891_v53 = vadd.f32 %v2887_v34, %v2879_v0 }
 0x5e7   : > { %v2892_v25 = vadd.f32 %v2888_v21, %v2880_v39  ;;  %v3223_v56 = vpop.permute.xlu0 %3222 }
 0x5e8   : > { %v2903_v36 = vadd.f32 %v2899_v51, %v2891_v53  ;;  %v3218_v49 = vpop.permute.xlu1 %3217 }
 0x5e9   : > { %v2904_v63 = vadd.f32 %v2900_v32, %v2892_v25 }
 0x5eb   : > { %v3233_v42 = vpop.permute.xlu0 %3232 }
 0x5ec   : > { %v3228_v21 = vpop.permute.xlu1 %3227 }
 0x5ed   : > { %v4225_v5 = vpop.eup %4224 }
 0x5ee   : > { %v2908_v22 = vrot.slane %v4225_v5, %v4588_v8  ;;  %v2924_v8 = vld [vmem:[%s5237_s1 + $0x288] sm:$0xff] }
 0x5ef   : > { %v3254_v5 = vld [vmem:[%s5237_s1 + $0x308] sm:$0xff] }
 0x5f0   : > { %v2909_v58 = vmul.f32 %v2908_v22, %v2901_v37  ;;  %v2910_v6 = vmul.f32 %v2908_v22, %v2902_v52  ;;  %v2911_v33 = vmul.f32 %v2908_v22, %v2903_v36  ;;  %v2912_v40 = vmul.f32 %v2908_v22, %v2904_v63  ;;  %v3252_v36 = vld [vmem:[%s5237_s1 + $0x2f8] sm:$0xff]  ;;  %v3253_v63 = vld [vmem:[%s5237_s1 + $0x300] sm:$0xff]  ;;  %v3267_v22 = vpop.permute.xlu0 %3266 }
 0x5f2   : > { %v4127_v44 = vpack.c.bf16 %v2910_v6, %v2909_v58  ;;  %v4131_v61 = vpack.c.bf16 %v2912_v40, %v2911_v33  ;;  %v3262_v58 = vpop.permute.xlu1 %3261 }
 0x5f4   : > { %4128 = vmatprep.subr.bf16.mxu1 %v4127_v44 }
 0x5f5   : > { %4130 = vmatpush3.bf16.msra.mxu1 %v4127_v44 }
 0x5f6   : > { %4132 = vmatprep.subr.bf16.mxu1 %v4131_v61 }
 0x5f9   : > { %4134 = vmatpush3.bf16.msra.mxu1 %v4131_v61 }
 0x5fa   : > { %4137 = vmatprep.subr.msk.bf16.mxu1 %vm4319_vm2, %v4333_v28 }
 0x5fc   : > { %3875 = vmatmul.mubr.msk.f32.vlgmr.msra.gmra.mrb[74].mxu1 %vm1236_vm15, %v2922_v19  ;;  %v3277_v19 = vpop.permute.xlu0 %3276 }
 0x5fd   : > { %3877 = vmatprep.mubr.msk.f32.mxu1 %vm1236_vm15, %v2923_v9  ;;  %4140 = vmatpush3.bf16.msk.msra.mxu1 %vm4319_vm2, %v4333_v28  ;;  %v2913_v28 = vld [vmem:[%s5237_s1 + $0x230] sm:$0xff] }
 0x600   : > { %3878 = vmatmul.mubr.msk.f32.gmra.mrb[76].mxu1 %vm1236_vm15, %v2924_v8 }
 0x601   : > { %3880 = vmatprep.mubr.msk.f32.mxu1 %vm1236_vm15, %v2925_v24  ;;  %v3272_v24 = vpop.permute.xlu1 %3271 }
 0x604   : > { %3881 = vmatmul.mubr.msk.f32.gmra.mrb[78].mxu1 %vm1236_vm15, %v2926_v13 }
 0x605   : > { %3883 = vmatprep.mubr.msk.f32.mxu1 %vm1236_vm15, %v2927_v55 }
 0x608   : > { %3884 = vmatmul.mubr.msk.f32.gmra.mrb[80].mxu1 %vm1236_vm15, %v2928_v15 }
 0x609   : > { %3890 = vmatprep.mubr.msk.f32.mxu1 %vm385_vm3, %v2913_v28 }
 0x60c   : > { %3891 = vmatmul.mubr.msk.f32.vlgmr.msra.gmra.mrb[74].mxu1 %vm385_vm3, %v2914_v45 }
 0x60d   : > { %3893 = vmatprep.mubr.msk.f32.mxu1 %vm385_vm3, %v2915_v43 }
 0x610   : > { %3894 = vmatmul.mubr.msk.f32.gmra.mrb[76].mxu1 %vm385_vm3, %v2916_v23  ;;  %v3380_v23 = vld [vmem:[%s5237_s1 + $0x330] sm:$0x1] }
 0x611   : > { %3896 = vmatprep.mubr.msk.f32.mxu1 %vm385_vm3, %v2917_v3  ;;  %v3385_v3 = vpop.permute.xlu1 %3384 }
 0x614   : > { %3897 = vmatmul.mubr.msk.f32.gmra.mrb[78].mxu1 %vm385_vm3, %v2918_v1 }
 0x615   : > { %3899 = vmatprep.mubr.msk.f32.mxu1 %vm385_vm3, %v2919_v46 }
 0x618   : > { %3900 = vmatmul.mubr.msk.f32.gmra.mrb[80].mxu1 %vm385_vm3, %v2920_v12 }
 0x6df   : > { %v3892_v48 = vpop.f32.mrb[74].mxu1 }
 0x6e0   : > { %v3236_v4 = vadd.f32 %v3892_v48, %v3203_v14  ;;  %v3148_v31 = vpop.f32.mrb[75].mxu1 }
 0x6e1   : > { %v3235_v20 = vadd.f32 %v3198_v7, %v3148_v31 }
 0x6e2   : > { %v3244_v60 = vmax.f32 %v3236_v4, 0.0 }
 0x6e3   : > { %v3243_v38 = vmax.f32 %v3235_v20, 0.0  ;;  %v3895_v54 = vpop.f32.mrb[76].mxu1 }
 0x6e4   : > { %v3238_v2 = vadd.f32 %v3895_v54, %v3213_v30  ;;  %v3158_v17 = vpop.f32.mrb[77].mxu1 }
 0x6e5   : > { %v4141_v57 = vpack.c.bf16 %v3244_v60, %v3243_v38  ;;  %v3237_v41 = vadd.f32 %v3208_v50, %v3158_v17 }
 0x6e6   : > { %v3246_v59 = vmax.f32 %v3238_v2, 0.0 }
 0x6e7   : > { %v3245_v35 = vmax.f32 %v3237_v41, 0.0  ;;  %v3898_v18 = vpop.f32.mrb[78].mxu1  ;;  %4142 = vmatprep.subr.bf16.mxu0 %v4141_v57 }
 0x6e8   : > { %v3240_v26 = vadd.f32 %v3898_v18, %v3223_v56  ;;  %v3168_v27 = vpop.f32.mrb[79].mxu1  ;;  %4144 = vmatpush3.bf16.msra.mxu0 %v4141_v57 }
 0x6e9   : > { %v4145_v11 = vpack.c.bf16 %v3246_v59, %v3245_v35  ;;  %v3239_v34 = vadd.f32 %v3218_v49, %v3168_v27 }
 0x6ea   : > { %v3248_v47 = vmax.f32 %v3240_v26, 0.0 }
 0x6eb   : > { %v3247_v62 = vmax.f32 %v3239_v34, 0.0  ;;  %v3901_v0 = vpop.f32.mrb[80].mxu1  ;;  %4146 = vmatprep.subr.bf16.mxu0 %v4145_v11 }
 0x6ec   : > { %v3242_v51 = vadd.f32 %v3901_v0, %v3233_v42  ;;  %v3178_v32 = vpop.f32.mrb[81].mxu1  ;;  %4148 = vmatpush3.bf16.msra.mxu0 %v4145_v11 }
 0x6ed   : > { %v4149_v37 = vpack.c.bf16 %v3248_v47, %v3247_v62  ;;  %v3241_v52 = vadd.f32 %v3228_v21, %v3178_v32 }
 0x6ee   : > { %v3250_v39 = vmax.f32 %v3242_v51, 0.0 }
 0x6ef   : > { %v3249_v53 = vmax.f32 %v3241_v52, 0.0  ;;  %4150 = vmatprep.subr.bf16.mxu0 %v4149_v37 }
 0x6f0   : > { %4152 = vmatpush3.bf16.msra.mxu0 %v4149_v37 }
 0x6f1   : > { %v4153_v25 = vpack.c.bf16 %v3250_v39, %v3249_v53 }
 0x6f3   : > { %4154 = vmatprep.subr.bf16.mxu0 %v4153_v25 }
 0x6f4   : > { %4156 = vmatpush3.bf16.msra.mxu0 %v4153_v25 }
 0x6f5   : > { %4157 = vmatprep.subr.bf16.mxu0 %v4253_v29 }
 0x6f7   : > { %3919 = vmatmul.mubr.msk.f32.vlgmr.msra.gmra.mrb[76].mxu0 %vm908_vm14, %v3252_v36 }
 0x6f8   : > { %3921 = vmatprep.mubr.msk.f32.mxu0 %vm908_vm14, %v3253_v63 }
 0x6fb   : > { %3922 = vmatmul.mubr.msk.f32.gmra.mrb[78].mxu0 %vm908_vm14, %v3254_v5 }
 0x6fc   : > { %3932 = vmatprep.mubr.msk.f32.mxu0 %vm4254_vm0, %v4252_v16 }
 0x7ca   : > { %v3920_v6 = vpop.f32.mrb[76].mxu0 }
 0x7cb   : > { %v3363_v33 = vadd.f32 %v3920_v6, %v3267_v22  ;;  %v3357_v40 = vpop.f32.mrb[77].mxu0 }
 0x7cc   : > { %v3358_v44 = vadd.f32 %v3357_v40, %v3262_v58 }
 0x7cd   : > { %v3377_v61 = vmax.f32 %v3363_v33, 0.0 }
 0x7ce   : > { %v3376_v9 = vmax.f32 %v3358_v44, 0.0  ;;  %v3923_v8 = vpop.f32.mrb[78].mxu0 }
 0x7cf   : > { %v3373_v13 = vadd.f32 %v3923_v8, %v3277_v19  ;;  %v3367_v55 = vpop.f32.mrb[79].mxu0 }
 0x7d0   : > { %v4158_v15 = vpack.c.bf16 %v3377_v61, %v3376_v9  ;;  %v3368_v28 = vadd.f32 %v3367_v55, %v3272_v24 }
 0x7d1   : > { %v3379_v45 = vmax.f32 %v3373_v13, 0.0 }
 0x7d2   : > { %v3378_v43 = vmax.f32 %v3368_v28, 0.0  ;;  %4159 = vmatpush3.bf16.msra.mxu0 %v4158_v15 }
 0x7d3   : > { %4160 = vmatprep.subr.bf16.mxu0 %v4253_v29 }
 0x7d4   : > { %v4161_v16 = vpack.c.bf16 %v3379_v45, %v3378_v43 }
 0x7d6   : > { %4162 = vmatpush3.bf16.msra.mxu0 %v4161_v16 }
 0x7d9   : > { %3933 = vmatmul.mubr.msk.f32.vlgmr.msra.gmra.mrb[80].mxu0 %vm1236_vm15, %v3380_v23 }
 0x8ac   : > { %v3456_v1 = vpop.f32.mrb[80].mxu0 }
 0x8ad   : > { %v3457_v46 = vadd.f32 %v3456_v1, %v3385_v3  ;;  %v3934_v29 = vpop.f32.mrb[81].mxu0 }
 0x8af   : > { %3460 = vst [vmem:[%s178_s30] sm:$0x1] %v3457_v46 }
 0x8b0 PF: > { %p9_p9 = scmp.ge.s32.totalorder %s4287_s13, 4   ;;  %s5241_s9 = smov %s4244_s10 }
 0x8b1   : > { %s5242_s10 = smov %s4296_s16  ;;  %s5243_s11 = smov %s4287_s13 }
 0x8b2   :  { %11 = sbr.rel (!%p9_p9) target bundleno = 2 (0x2), region = 86 }

</bundles_post_ra>
